<compile_context>
chip_gen: v6e
topology: v6e:2x2x1
jax: 0.10.0
libtpu: 0.0.40
codegen_flags: <defaults>
</compile_context>

<pallas_src>
import functools
import math

import numpy as np
import jax
import jax.numpy as jnp
from jax.experimental import pallas as pl
from jax.experimental.pallas import tpu as pltpu

# ------------------------------ configuration ------------------------------
BATCH = 2
SEQ_LEN = 8          # == max_seq_len (pos_emb == 'one_hot' requires this)
HIDDEN_DIM = 32
N_HEADS = 4
POS_EMB = 'one_hot'  # 'one_hot' | 'float' | 'none'

_VMEM_SPEC = pl.BlockSpec(memory_space=pltpu.MemorySpace.VMEM)
_NEG_BIG = -1e30     # additive mask value (exp underflows to exactly 0 in f32)


# ------------------------------ Pallas kernel -------------------------------
def _attn_agg_kernel(x_ref, mask_ref, pos_ref, q_ref,
                     wq_ref, bq_ref, wk_ref, bk_ref, wv_ref, bv_ref,
                     wo_ref, bo_ref, g_ref, gt_ref, o_ref, *, n_heads):
    """Fused AttentionAggregationLayer forward.

    x_ref   : (B, S, H)         mask_ref: (B, S, 1)  (1.0 = padded key)
    pos_ref : (S, H)            q_ref   : (1, H)     (learned query)
    w*_ref  : (H, H)  (already transposed to (in, out) so we compute x @ W)
    b*_ref  : (1, H)
    g_ref   : (H, n_heads) head one-hot   gt_ref: (n_heads, H)
    o_ref   : (B, H)
    """
    B, S, H = x_ref.shape
    hd = H // n_heads
    scale = 1.0 / math.sqrt(hd)
    prec = jax.lax.Precision.HIGHEST

    # Hoist all weight / constant loads out of the batch loop.
    pos = pos_ref[...]
    G, Gt = g_ref[...], gt_ref[...]
    wq, wk, wv, wo = wq_ref[...], wk_ref[...], wv_ref[...], wo_ref[...]
    bq, bk, bv, bo = bq_ref[...], bk_ref[...], bv_ref[...], bo_ref[...]

    # Query projection (the query is a learned parameter, identical for every
    # batch element), scaled by 1/sqrt(head_dim) as in torch MHA.
    qp = (jnp.dot(q_ref[...], wq, preferred_element_type=jnp.float32,
                  precision=prec) + bq) * scale                      # (1, H)

    for b in range(B):  # static unroll: B is tiny, everything stays in vregs/VMEM
        xb = x_ref[b] + pos                                           # (S, H)

        kb = jnp.dot(xb, wk, preferred_element_type=jnp.float32,
                     precision=prec) + bk                             # (S, H)
        vb = jnp.dot(xb, wv, preferred_element_type=jnp.float32,
                     precision=prec) + bv                             # (S, H)

        # Per-head scores: scores[s, h] = sum_d q[h*hd+d] * k[s, h*hd+d]
        scores = jnp.dot(kb * qp, G, preferred_element_type=jnp.float32,
                         precision=prec)                              # (S, n_heads)
        # key_padding_mask: masked keys get a huge negative logit.
        scores = scores + mask_ref[b] * _NEG_BIG                      # (S, n_heads)

        # Masked softmax over the sequence axis, per head.
        m = jnp.max(scores, axis=0, keepdims=True)                    # (1, n_heads)
        e = jnp.exp(scores - m)                                       # (S, n_heads)
        w = e / jnp.sum(e, axis=0, keepdims=True)                     # (S, n_heads)

        # Broadcast each head's weights back over its hd channels and reduce
        # over the sequence: attn[h*hd+d] = sum_s w[s,h] * v[s, h*hd+d].
        wfull = jnp.dot(w, Gt, preferred_element_type=jnp.float32,
                        precision=prec)                               # (S, H)
        attn = jnp.sum(wfull * vb, axis=0, keepdims=True)             # (1, H)

        out = jnp.dot(attn, wo, preferred_element_type=jnp.float32,
                      precision=prec) + bo                            # (1, H)
        o_ref[pl.ds(b, 1), :] = out


# ------------------------------ wrappers ------------------------------------
def attention_aggregation_forward(kparams, x, mask, *, n_heads=N_HEADS):
    """x: (B, S, H) f32, mask: (B, S) bool (True = padded).  Returns (B, H)."""
    B, S, H = x.shape
    mask_f = mask.astype(jnp.float32).reshape(B, S, 1)
    return pl.pallas_call(
        functools.partial(_attn_agg_kernel, n_heads=n_heads),
        out_shape=jax.ShapeDtypeStruct((B, H), jnp.float32),
        in_specs=[_VMEM_SPEC] * 14,
        out_specs=_VMEM_SPEC,
    )(x, mask_f, kparams['pos'], kparams['q'],
      kparams['wq'], kparams['bq'], kparams['wk'], kparams['bk'],
      kparams['wv'], kparams['bv'], kparams['wo'], kparams['bo'],
      kparams['G'], kparams['Gt'])


def init_params(key, seq_len, hidden_dim):
    """Synthetic params in PyTorch layout (in_proj packed (3H,H), out_proj (H,H))."""
    ks = jax.random.split(key, 6)

    def nrm(k, shape, scale=0.1):
        return scale * jax.random.normal(k, shape, dtype=jnp.float32)

    return {
        'in_proj_w': nrm(ks[0], (3 * hidden_dim, hidden_dim)),
        'in_proj_b': nrm(ks[1], (3 * hidden_dim,), 0.01),
        'out_w':     nrm(ks[2], (hidden_dim, hidden_dim)),
        'out_b':     nrm(ks[3], (hidden_dim,), 0.01),
        'q':         jax.random.normal(ks[4], (1, 1, hidden_dim), jnp.float32),
        'pos':       jax.random.normal(ks[5], (seq_len, hidden_dim), jnp.float32),
    }


def prepare_kernel_params(tp, n_heads, pos_emb=POS_EMB):
    """One-time repack of torch-layout params into kernel-friendly layouts."""
    H = tp['out_w'].shape[0]
    hd = H // n_heads
    Wq, Wk, Wv = jnp.split(tp['in_proj_w'], 3, axis=0)      # each (H, H), torch (out,in)
    bq, bk, bv = jnp.split(tp['in_proj_b'], 3)
    G = (np.arange(H)[:, None] // hd == np.arange(n_heads)[None, :]).astype(np.float32)
    pos = tp['pos'] if pos_emb == 'one_hot' else jnp.zeros_like(tp['pos'])
    return {
        'pos': pos,
        'q': tp['q'].reshape(1, H),
        'wq': Wq.T, 'bq': bq.reshape(1, H),
        'wk': Wk.T, 'bk': bk.reshape(1, H),
        'wv': Wv.T, 'bv': bv.reshape(1, H),
        'wo': tp['out_w'].T, 'bo': tp['out_b'].reshape(1, H),
        'G': jnp.asarray(G), 'Gt': jnp.asarray(G.T),
    }


def reference_forward(tp, x, mask, n_heads, pos_emb=POS_EMB):
    """Pure-JAX mirror of torch nn.MultiheadAttention (eval mode) for validation."""
    HI = jax.lax.Precision.HIGHEST
    B, S, H = x.shape
    hd = H // n_heads
    xp = x + tp['pos'][None] if pos_emb == 'one_hot' else x
    Wq, Wk, Wv = jnp.split(tp['in_proj_w'], 3, axis=0)
    bq, bk, bv = jnp.split(tp['in_proj_b'], 3)
    q = jnp.broadcast_to(tp['q'], (B, 1, H))
    qp = jnp.einsum('bqh,oh->bqo', q, Wq, precision=HI) + bq
    kp = jnp.einsum('bsh,oh->bso', xp, Wk, precision=HI) + bk
    vp = jnp.einsum('bsh,oh->bso', xp, Wv, precision=HI) + bv
    qh = qp.reshape(B, 1, n_heads, hd)
    kh = kp.reshape(B, S, n_heads, hd)
    vh = vp.reshape(B, S, n_heads, hd)
    scores = jnp.einsum('bqnd,bsnd->bnqs', qh, kh, precision=HI) / math.sqrt(hd)
    scores = jnp.where(mask[:, None, None, :], _NEG_BIG, scores)
    w = jax.nn.softmax(scores, axis=-1)
    o = jnp.einsum('bnqs,bsnd->bqnd', w, vh, precision=HI).reshape(B, 1, H)
    out = jnp.einsum('bqh,oh->bqo', o, tp['out_w'], precision=HI) + tp['out_b']
    return out[:, 0, :]


# --------------------------------- main --------------------------------------
if __name__ == "__main__":
    key = jax.random.PRNGKey(0)
    k_param, k_x = jax.random.split(key, 2)

    torch_params = init_params(k_param, SEQ_LEN, HIDDEN_DIM)
    kparams = prepare_kernel_params(torch_params, N_HEADS)

    x = jax.random.normal(k_x, (BATCH, SEQ_LEN, HIDDEN_DIM), dtype=jnp.float32)
    lengths = jnp.array([SEQ_LEN, 5])                     # batch 1 has 3 padded keys
    mask = jnp.arange(SEQ_LEN)[None, :] >= lengths[:, None]   # (B, S) bool, True = pad

    fwd = jax.jit(functools.partial(attention_aggregation_forward, kparams))
    out = fwd(x, mask)
    jax.block_until_ready(out)

    ref = reference_forward(torch_params, x, mask, N_HEADS)
    assert out.shape == (BATCH, HIDDEN_DIM)
    max_err = float(jnp.max(jnp.abs(out - ref)))
    assert jnp.allclose(out, ref, atol=1e-3, rtol=1e-3), f"max_err={max_err}"
    print("KERNEL_OK")
</pallas_src>

<mosaic_0001>
module attributes {stable_mosaic.version = 11 : i64} {
  func.func @_attn_agg_kernel(%arg0: memref<2x8x32xf32, #tpu.memory_space<vmem>>, %arg1: memref<2x8x1xf32, #tpu.memory_space<vmem>>, %arg2: memref<8x32xf32, #tpu.memory_space<vmem>>, %arg3: memref<1x32xf32, #tpu.memory_space<vmem>>, %arg4: memref<32x32xf32, #tpu.memory_space<vmem>>, %arg5: memref<1x32xf32, #tpu.memory_space<vmem>>, %arg6: memref<32x32xf32, #tpu.memory_space<vmem>>, %arg7: memref<1x32xf32, #tpu.memory_space<vmem>>, %arg8: memref<32x32xf32, #tpu.memory_space<vmem>>, %arg9: memref<1x32xf32, #tpu.memory_space<vmem>>, %arg10: memref<32x32xf32, #tpu.memory_space<vmem>>, %arg11: memref<1x32xf32, #tpu.memory_space<vmem>>, %arg12: memref<32x4xf32, #tpu.memory_space<vmem>>, %arg13: memref<4x32xf32, #tpu.memory_space<vmem>>, %arg14: memref<2x32xf32, #tpu.memory_space<vmem>>) attributes {dimension_semantics = [], scalar_prefetch = 0 : i64, scratch_operands = 0 : i64, tpu.core_type = #tpu.core_type<tc>} {
    %c0 = arith.constant 0 : index
    %c0_0 = arith.constant 0 : index
    %0 = vector.load %arg2[%c0, %c0_0] : memref<8x32xf32, #tpu.memory_space<vmem>>, vector<8x32xf32>
    %c0_1 = arith.constant 0 : index
    %c0_2 = arith.constant 0 : index
    %1 = vector.load %arg12[%c0_1, %c0_2] : memref<32x4xf32, #tpu.memory_space<vmem>>, vector<32x4xf32>
    %c0_3 = arith.constant 0 : index
    %c0_4 = arith.constant 0 : index
    %2 = vector.load %arg13[%c0_3, %c0_4] : memref<4x32xf32, #tpu.memory_space<vmem>>, vector<4x32xf32>
    %c0_5 = arith.constant 0 : index
    %c0_6 = arith.constant 0 : index
    %3 = vector.load %arg4[%c0_5, %c0_6] : memref<32x32xf32, #tpu.memory_space<vmem>>, vector<32x32xf32>
    %c0_7 = arith.constant 0 : index
    %c0_8 = arith.constant 0 : index
    %4 = vector.load %arg6[%c0_7, %c0_8] : memref<32x32xf32, #tpu.memory_space<vmem>>, vector<32x32xf32>
    %c0_9 = arith.constant 0 : index
    %c0_10 = arith.constant 0 : index
    %5 = vector.load %arg8[%c0_9, %c0_10] : memref<32x32xf32, #tpu.memory_space<vmem>>, vector<32x32xf32>
    %c0_11 = arith.constant 0 : index
    %c0_12 = arith.constant 0 : index
    %6 = vector.load %arg10[%c0_11, %c0_12] : memref<32x32xf32, #tpu.memory_space<vmem>>, vector<32x32xf32>
    %c0_13 = arith.constant 0 : index
    %c0_14 = arith.constant 0 : index
    %7 = vector.load %arg5[%c0_13, %c0_14] : memref<1x32xf32, #tpu.memory_space<vmem>>, vector<1x32xf32>
    %c0_15 = arith.constant 0 : index
    %c0_16 = arith.constant 0 : index
    %8 = vector.load %arg7[%c0_15, %c0_16] : memref<1x32xf32, #tpu.memory_space<vmem>>, vector<1x32xf32>
    %c0_17 = arith.constant 0 : index
    %c0_18 = arith.constant 0 : index
    %9 = vector.load %arg9[%c0_17, %c0_18] : memref<1x32xf32, #tpu.memory_space<vmem>>, vector<1x32xf32>
    %c0_19 = arith.constant 0 : index
    %c0_20 = arith.constant 0 : index
    %10 = vector.load %arg11[%c0_19, %c0_20] : memref<1x32xf32, #tpu.memory_space<vmem>>, vector<1x32xf32>
    %c0_21 = arith.constant 0 : index
    %c0_22 = arith.constant 0 : index
    %11 = vector.load %arg3[%c0_21, %c0_22] : memref<1x32xf32, #tpu.memory_space<vmem>>, vector<1x32xf32>
    %cst = arith.constant dense<0.000000e+00> : vector<1x32xf32>
    %12 = tpu.matmul %11, %3, %cst {dimension_numbers = #tpu.dot_dimension_numbers<[1], [0], [0], [1], [0, 0, 1, 1], [], []>, precision = #tpu.contract_precision<fp32>} : vector<1x32xf32>, vector<32x32xf32>, vector<1x32xf32> -> vector<1x32xf32>
    %13 = arith.addf %12, %7 : vector<1x32xf32>
    %cst_23 = arith.constant 0.353553385 : f32
    %14 = vector.broadcast %cst_23 : f32 to vector<1x32xf32>
    %15 = arith.mulf %13, %14 : vector<1x32xf32>
    %c0_24 = arith.constant 0 : index
    %c0_25 = arith.constant 0 : index
    %c0_26 = arith.constant 0 : index
    %16 = vector.load %arg0[%c0_24, %c0_25, %c0_26] : memref<2x8x32xf32, #tpu.memory_space<vmem>>, vector<1x8x32xf32>
    %17 = vector.shape_cast %16 : vector<1x8x32xf32> to vector<8x32xf32>
    %18 = arith.addf %17, %0 : vector<8x32xf32>
    %cst_27 = arith.constant dense<0.000000e+00> : vector<8x32xf32>
    %19 = tpu.matmul %18, %4, %cst_27 {dimension_numbers = #tpu.dot_dimension_numbers<[1], [0], [0], [1], [0, 0, 1, 1], [], []>, precision = #tpu.contract_precision<fp32>} : vector<8x32xf32>, vector<32x32xf32>, vector<8x32xf32> -> vector<8x32xf32>
    %20 = vector.broadcast %8 : vector<1x32xf32> to vector<8x32xf32>
    %21 = arith.addf %19, %20 : vector<8x32xf32>
    %cst_28 = arith.constant dense<0.000000e+00> : vector<8x32xf32>
    %22 = tpu.matmul %18, %5, %cst_28 {dimension_numbers = #tpu.dot_dimension_numbers<[1], [0], [0], [1], [0, 0, 1, 1], [], []>, precision = #tpu.contract_precision<fp32>} : vector<8x32xf32>, vector<32x32xf32>, vector<8x32xf32> -> vector<8x32xf32>
    %23 = vector.broadcast %9 : vector<1x32xf32> to vector<8x32xf32>
    %24 = arith.addf %22, %23 : vector<8x32xf32>
    %25 = vector.broadcast %15 : vector<1x32xf32> to vector<8x32xf32>
    %26 = arith.mulf %21, %25 : vector<8x32xf32>
    %cst_29 = arith.constant dense<0.000000e+00> : vector<8x4xf32>
    %27 = tpu.matmul %26, %1, %cst_29 {dimension_numbers = #tpu.dot_dimension_numbers<[1], [0], [0], [1], [0, 0, 1, 1], [], []>, precision = #tpu.contract_precision<fp32>} : vector<8x32xf32>, vector<32x4xf32>, vector<8x4xf32> -> vector<8x4xf32>
    %c0_30 = arith.constant 0 : index
    %c0_31 = arith.constant 0 : index
    %c0_32 = arith.constant 0 : index
    %28 = vector.load %arg1[%c0_30, %c0_31, %c0_32] : memref<2x8x1xf32, #tpu.memory_space<vmem>>, vector<1x8x1xf32>
    %29 = vector.shape_cast %28 : vector<1x8x1xf32> to vector<8x1xf32>
    %cst_33 = arith.constant -1.000000e+30 : f32
    %30 = vector.broadcast %cst_33 : f32 to vector<8x1xf32>
    %31 = arith.mulf %29, %30 : vector<8x1xf32>
    %32 = vector.broadcast %31 : vector<8x1xf32> to vector<8x4xf32>
    %33 = arith.addf %27, %32 : vector<8x4xf32>
    %cst_34 = arith.constant dense<0xFF800000> : vector<4xf32>
    %34 = vector.multi_reduction <maximumf>, %33, %cst_34 [0] : vector<8x4xf32> to vector<4xf32>
    %35 = vector.shape_cast %34 : vector<4xf32> to vector<1x4xf32>
    %36 = vector.broadcast %35 : vector<1x4xf32> to vector<8x4xf32>
    %37 = arith.subf %33, %36 : vector<8x4xf32>
    %38 = math.exp %37 : vector<8x4xf32>
    %cst_35 = arith.constant dense<0.000000e+00> : vector<4xf32>
    %39 = vector.multi_reduction <add>, %38, %cst_35 [0] : vector<8x4xf32> to vector<4xf32>
    %40 = vector.shape_cast %39 : vector<4xf32> to vector<1x4xf32>
    %41 = vector.broadcast %40 : vector<1x4xf32> to vector<8x4xf32>
    %42 = arith.divf %38, %41 : vector<8x4xf32>
    %cst_36 = arith.constant dense<0.000000e+00> : vector<8x32xf32>
    %43 = tpu.matmul %42, %2, %cst_36 {dimension_numbers = #tpu.dot_dimension_numbers<[1], [0], [0], [1], [0, 0, 1, 1], [], []>, precision = #tpu.contract_precision<fp32>} : vector<8x4xf32>, vector<4x32xf32>, vector<8x32xf32> -> vector<8x32xf32>
    %44 = arith.mulf %43, %24 : vector<8x32xf32>
    %cst_37 = arith.constant dense<0.000000e+00> : vector<32xf32>
    %45 = vector.multi_reduction <add>, %44, %cst_37 [0] : vector<8x32xf32> to vector<32xf32>
    %46 = vector.shape_cast %45 : vector<32xf32> to vector<1x32xf32>
    %cst_38 = arith.constant dense<0.000000e+00> : vector<1x32xf32>
    %47 = tpu.matmul %46, %6, %cst_38 {dimension_numbers = #tpu.dot_dimension_numbers<[1], [0], [0], [1], [0, 0, 1, 1], [], []>, precision = #tpu.contract_precision<fp32>} : vector<1x32xf32>, vector<32x32xf32>, vector<1x32xf32> -> vector<1x32xf32>
    %48 = arith.addf %47, %10 : vector<1x32xf32>
    %c0_39 = arith.constant 0 : index
    %c0_40 = arith.constant 0 : index
    %49 = vector.load %arg14[%c0_39, %c0_40] : memref<2x32xf32, #tpu.memory_space<vmem>>, vector<1x32xf32>
    tpu.vector_store %arg14[%c0_39, %c0_40], %48 {strides = array<i32>} : memref<2x32xf32, #tpu.memory_space<vmem>>, vector<1x32xf32>,
    %c1 = arith.constant 1 : index
    %c0_41 = arith.constant 0 : index
    %c0_42 = arith.constant 0 : index
    %50 = vector.load %arg0[%c1, %c0_41, %c0_42] : memref<2x8x32xf32, #tpu.memory_space<vmem>>, vector<1x8x32xf32>
    %51 = vector.shape_cast %50 : vector<1x8x32xf32> to vector<8x32xf32>
    %52 = arith.addf %51, %0 : vector<8x32xf32>
    %cst_43 = arith.constant dense<0.000000e+00> : vector<8x32xf32>
    %53 = tpu.matmul %52, %4, %cst_43 {dimension_numbers = #tpu.dot_dimension_numbers<[1], [0], [0], [1], [0, 0, 1, 1], [], []>, precision = #tpu.contract_precision<fp32>} : vector<8x32xf32>, vector<32x32xf32>, vector<8x32xf32> -> vector<8x32xf32>
    %54 = vector.broadcast %8 : vector<1x32xf32> to vector<8x32xf32>
    %55 = arith.addf %53, %54 : vector<8x32xf32>
    %cst_44 = arith.constant dense<0.000000e+00> : vector<8x32xf32>
    %56 = tpu.matmul %52, %5, %cst_44 {dimension_numbers = #tpu.dot_dimension_numbers<[1], [0], [0], [1], [0, 0, 1, 1], [], []>, precision = #tpu.contract_precision<fp32>} : vector<8x32xf32>, vector<32x32xf32>, vector<8x32xf32> -> vector<8x32xf32>
    %57 = vector.broadcast %9 : vector<1x32xf32> to vector<8x32xf32>
    %58 = arith.addf %56, %57 : vector<8x32xf32>
    %59 = vector.broadcast %15 : vector<1x32xf32> to vector<8x32xf32>
    %60 = arith.mulf %55, %59 : vector<8x32xf32>
    %cst_45 = arith.constant dense<0.000000e+00> : vector<8x4xf32>
    %61 = tpu.matmul %60, %1, %cst_45 {dimension_numbers = #tpu.dot_dimension_numbers<[1], [0], [0], [1], [0, 0, 1, 1], [], []>, precision = #tpu.contract_precision<fp32>} : vector<8x32xf32>, vector<32x4xf32>, vector<8x4xf32> -> vector<8x4xf32>
    %c1_46 = arith.constant 1 : index
    %c0_47 = arith.constant 0 : index
    %c0_48 = arith.constant 0 : index
    %62 = vector.load %arg1[%c1_46, %c0_47, %c0_48] : memref<2x8x1xf32, #tpu.memory_space<vmem>>, vector<1x8x1xf32>
    %63 = vector.shape_cast %62 : vector<1x8x1xf32> to vector<8x1xf32>
    %cst_49 = arith.constant -1.000000e+30 : f32
    %64 = vector.broadcast %cst_49 : f32 to vector<8x1xf32>
    %65 = arith.mulf %63, %64 : vector<8x1xf32>
    %66 = vector.broadcast %65 : vector<8x1xf32> to vector<8x4xf32>
    %67 = arith.addf %61, %66 : vector<8x4xf32>
    %cst_50 = arith.constant dense<0xFF800000> : vector<4xf32>
    %68 = vector.multi_reduction <maximumf>, %67, %cst_50 [0] : vector<8x4xf32> to vector<4xf32>
    %69 = vector.shape_cast %68 : vector<4xf32> to vector<1x4xf32>
    %70 = vector.broadcast %69 : vector<1x4xf32> to vector<8x4xf32>
    %71 = arith.subf %67, %70 : vector<8x4xf32>
    %72 = math.exp %71 : vector<8x4xf32>
    %cst_51 = arith.constant dense<0.000000e+00> : vector<4xf32>
    %73 = vector.multi_reduction <add>, %72, %cst_51 [0] : vector<8x4xf32> to vector<4xf32>
    %74 = vector.shape_cast %73 : vector<4xf32> to vector<1x4xf32>
    %75 = vector.broadcast %74 : vector<1x4xf32> to vector<8x4xf32>
    %76 = arith.divf %72, %75 : vector<8x4xf32>
    %cst_52 = arith.constant dense<0.000000e+00> : vector<8x32xf32>
    %77 = tpu.matmul %76, %2, %cst_52 {dimension_numbers = #tpu.dot_dimension_numbers<[1], [0], [0], [1], [0, 0, 1, 1], [], []>, precision = #tpu.contract_precision<fp32>} : vector<8x4xf32>, vector<4x32xf32>, vector<8x32xf32> -> vector<8x32xf32>
    %78 = arith.mulf %77, %58 : vector<8x32xf32>
    %cst_53 = arith.constant dense<0.000000e+00> : vector<32xf32>
    %79 = vector.multi_reduction <add>, %78, %cst_53 [0] : vector<8x32xf32> to vector<32xf32>
    %80 = vector.shape_cast %79 : vector<32xf32> to vector<1x32xf32>
    %cst_54 = arith.constant dense<0.000000e+00> : vector<1x32xf32>
    %81 = tpu.matmul %80, %6, %cst_54 {dimension_numbers = #tpu.dot_dimension_numbers<[1], [0], [0], [1], [0, 0, 1, 1], [], []>, precision = #tpu.contract_precision<fp32>} : vector<1x32xf32>, vector<32x32xf32>, vector<1x32xf32> -> vector<1x32xf32>
    %82 = arith.addf %81, %10 : vector<1x32xf32>
    %c1_55 = arith.constant 1 : index
    %c0_56 = arith.constant 0 : index
    %83 = vector.load %arg14[%c1_55, %c0_56] : memref<2x32xf32, #tpu.memory_space<vmem>>, vector<1x32xf32>
    tpu.vector_store %arg14[%c1_55, %c0_56], %82 {strides = array<i32>} : memref<2x32xf32, #tpu.memory_space<vmem>>, vector<1x32xf32>,
    return
  }
}

</mosaic_0001>

<bundles_post_ra>
// kernel: attention_aggregation_forward.1
= control target key start
LH: loop header
LB: loop body
LE: loop exit
PB: predicated region body
PF: predicated region fallthrough
CT: control target
= control target key end

     0   :  { %19 = vsyncpa [#allocation3], 0  ;;  %s7903_s0 = inlined_call_operand.hbm [shape: f32[2,8,32], index: 0, kind: input, shape index: {}]   ;;  %s7904_s1 = inlined_call_operand.vmem [shape: f32[2,8,1], index: 1, kind: input, shape index: {}]   ;;  %s7905_s2 = inlined_call_operand.vmem [shape: f32[8,32], index: 2, kind: input, shape index: {}]   ;;  %s7906_s3 = inlined_call_operand.hbm [shape: f32[1,32], index: 3, kind: input, shape index: {}]   ;;  %s7907_s4 = inlined_call_operand.hbm [shape: f32[32,32], index: 4, kind: input, shape index: {}]   ;;  %s7908_s5 = inlined_call_operand.hbm [shape: f32[1,32], index: 5, kind: input, shape index: {}]   ;;  %s7909_s6 = inlined_call_operand.hbm [shape: f32[32,32], index: 6, kind: input, shape index: {}]   ;;  %s7910_s7 = inlined_call_operand.hbm [shape: f32[1,32], index: 7, kind: input, shape index: {}]   ;;  %s7911_s8 = inlined_call_operand.hbm [shape: f32[32,32], index: 8, kind: input, shape index: {}]   ;;  %s7912_s9 = inlined_call_operand.hbm [shape: f32[1,32], index: 9, kind: input, shape index: {}]   ;;  %s7913_s10 = inlined_call_operand.hbm [shape: f32[32,32], index: 10, kind: input, shape index: {}]   ;;  %s7914_s11 = inlined_call_operand.hbm [shape: f32[1,32], index: 11, kind: input, shape index: {}]   ;;  %s7915_s12 = inlined_call_operand.vmem [shape: f32[32,4], index: 12, kind: input, shape index: {}]   ;;  %s7916_s13 = inlined_call_operand.vmem [shape: f32[4,32], index: 13, kind: input, shape index: {}]   ;;  %s7917_s14 = inlined_call_operand.hbm [shape: f32[2,32], index: 14, kind: output, shape index: {}]  }
   0x1   :  { %20 = vsyncpa [#allocation6], 0 }
   0x2   :  { %21 = vsyncpa [#allocation9], 0 }
   0x3   :  { %22 = vsyncpa [#allocation12], 0 }
   0x4   :  { %23 = vsyncpa [#allocation15], 0 }
   0x5   :  { %24 = vsyncpa [#allocation18], 0 }
   0x6   :  { %25 = vsyncpa [#allocation4], 0  ;;  %s6818_s29 = smov [#allocation5]   ;;  %s6819_s15 = smov [#allocation8]  }
   0x7   :  { %s48_s30 = sshll.u32 %s6818_s29, 4  ;;  %s70_s16 = sshll.u32 %s6819_s15, 4  ;;  %s49_s30 = int_to_ptr.vmem [resolvable:$true] %s48_s30  ;;  %s71_s16 = int_to_ptr.vmem [resolvable:$true] %s70_s16 }
   0x8   :  { %s6592_s17 = scalar_lea.vmem %s49_s30, 16  ;;  %s6596_s18 = scalar_lea.vmem %s49_s30, 32 }
   0x9   :  { %p6593_p0 = scmp.ne.s32.totalorder %s49_s30, %s6592_s17  ;;  %p6597_p1 = scmp.lt.s32.totalorder %s49_s30, %s49_s30 }
   0xa   :  { %p6598_p2 = scmp.lt.s32.totalorder %s6596_s18, %s6592_s17 }
   0xc   :  { %p6599_p3 = por %p6598_p2, %p6597_p1 }
   0xe   :  { %p6600_p4 = pnand %p6599_p3, %p6593_p0 }
  0x10   :  { %6603 = shalt.err (!%p6600_p4)
}
  0x11   :  { %51 = dma.hbm_to_vmem [thread:$0]  %s7906_s3, 16, %s49_s30, [#allocation6]  }
  0x12   :  { %s6612_s21 = scalar_lea.vmem %s71_s16, 16  ;;  %s6616_s22 = scalar_lea.vmem %s71_s16, 32 }
  0x13   :  { %p6613_p5 = scmp.ne.s32.totalorder %s71_s16, %s6612_s21  ;;  %p6617_p6 = scmp.lt.s32.totalorder %s71_s16, %s71_s16 }
  0x14   :  { %p6618_p7 = scmp.lt.s32.totalorder %s6616_s22, %s6612_s21 }
  0x16   :  { %p6619_p8 = por %p6618_p7, %p6617_p6 }
  0x18   :  { %p6620_p9 = pnand %p6619_p8, %p6613_p5 }
  0x1a   :  { %6623 = shalt.err (!%p6620_p9)
}
  0x1b   :  { %73 = dma.hbm_to_vmem [thread:$0]  %s7908_s5, 16, %s71_s16, [#allocation9]  }
  0x1c   :  { %s6820_s25 = smov [#allocation11]   ;;  %s6821_s27 = smov [#allocation14]  }
  0x1d   :  { %s92_s26 = sshll.u32 %s6820_s25, 4  ;;  %s114_s28 = sshll.u32 %s6821_s27, 4  ;;  %s93_s26 = int_to_ptr.vmem [resolvable:$true] %s92_s26  ;;  %s115_s28 = int_to_ptr.vmem [resolvable:$true] %s114_s28 }
  0x1e   :  { %s6632_s29 = scalar_lea.vmem %s93_s26, 16  ;;  %s6636_s3 = scalar_lea.vmem %s93_s26, 32 }
  0x1f   :  { %p6633_p10 = scmp.ne.s32.totalorder %s93_s26, %s6632_s29  ;;  %p6637_p11 = scmp.lt.s32.totalorder %s93_s26, %s93_s26 }
  0x20   :  { %p6638_p12 = scmp.lt.s32.totalorder %s6636_s3, %s6632_s29 }
  0x22   :  { %p6639_p13 = por %p6638_p12, %p6637_p11 }
  0x24   :  { %p6640_p0 = pnand %p6639_p13, %p6633_p10 }
  0x26   :  { %6643 = shalt.err (!%p6640_p0)
}
  0x27   :  { %95 = dma.hbm_to_vmem [thread:$0]  %s7910_s7, 16, %s93_s26, [#allocation12]  }
  0x28   :  { %s6652_s17 = scalar_lea.vmem %s115_s28, 16  ;;  %s6656_s5 = scalar_lea.vmem %s115_s28, 32 }
  0x29   :  { %p6653_p1 = scmp.ne.s32.totalorder %s115_s28, %s6652_s17  ;;  %p6657_p2 = scmp.lt.s32.totalorder %s115_s28, %s115_s28 }
  0x2a   :  { %p6658_p3 = scmp.lt.s32.totalorder %s6656_s5, %s6652_s17 }
  0x2c   :  { %p6659_p4 = por %p6658_p3, %p6657_p2 }
  0x2e   :  { %p6660_p5 = pnand %p6659_p4, %p6653_p1 }
  0x30   :  { %6663 = shalt.err (!%p6660_p5)
}
  0x31   :  { %117 = dma.hbm_to_vmem [thread:$0]  %s7912_s9, 16, %s115_s28, [#allocation15]  }
  0x32   :  { %s6822_s19 = smov [#allocation2]  }
  0x33   :  { %s31_s20 = sshll.u32 %s6822_s19, 4  ;;  %s32_s20 = int_to_ptr.vmem [resolvable:$true] %s31_s20 }
  0x34   :  { %s6672_s21 = scalar_lea.vmem %s32_s20, 256  ;;  %p6677_p7 = scmp.lt.s32.totalorder %s32_s20, %s32_s20 }
  0x35   :  { %p6673_p6 = scmp.ne.s32.totalorder %s32_s20, %s6672_s21  ;;  %p6678_p8 = scmp.lt.s32.totalorder %s6672_s21, %s6672_s21 }
  0x37   :  { %p6679_p9 = por %p6678_p8, %p6677_p7 }
  0x39   :  { %p6680_p10 = pnand %p6679_p9, %p6673_p6 }
  0x3b   :  { %6683 = shalt.err (!%p6680_p10)
}
  0x3c   :  { %s6823_s7 = smov 128   ;;  %s6824_s22 = smov 8  }
  0x3d   :  { %37 = dma.hbm_to_vmem [thread:$0]  %s7903_s0, 256, %s32_s20, [#allocation3], %s6823_s7, %s6823_s7, %s6824_s22  }
  0x3e   :  { %s6825_s9 = smov [#allocation7]   ;;  %s6826_s26 = smov [#allocation10]  }
  0x3f   :  { %s57_s25 = sshll.u32 %s6825_s9, 4  ;;  %s79_s27 = sshll.u32 %s6826_s26, 4  ;;  %s58_s25 = int_to_ptr.vmem [resolvable:$true] %s57_s25  ;;  %s80_s27 = int_to_ptr.vmem [resolvable:$true] %s79_s27 }
  0x40   :  { %s6692_s28 = scalar_lea.vmem %s58_s25, 512  ;;  %p6697_p12 = scmp.lt.s32.totalorder %s58_s25, %s58_s25 }
  0x41   :  { %p6693_p11 = scmp.ne.s32.totalorder %s58_s25, %s6692_s28  ;;  %p6698_p13 = scmp.lt.s32.totalorder %s6692_s28, %s6692_s28 }
  0x43   :  { %p6699_p0 = por %p6698_p13, %p6697_p12 }
  0x45   :  { %p6700_p1 = pnand %p6699_p0, %p6693_p11 }
  0x47   :  { %6703 = shalt.err (!%p6700_p1)
}
  0x48   :  { %63 = dma.hbm_to_vmem [thread:$0]  %s7907_s4, 512, %s58_s25, [#allocation6], %s6823_s7, %s6823_s7, %s6824_s22  }
  0x49   :  { %s6712_s0 = scalar_lea.vmem %s80_s27, 512  ;;  %p6717_p3 = scmp.lt.s32.totalorder %s80_s27, %s80_s27 }
  0x4a   :  { %p6713_p2 = scmp.ne.s32.totalorder %s80_s27, %s6712_s0  ;;  %p6718_p4 = scmp.lt.s32.totalorder %s6712_s0, %s6712_s0 }
  0x4c   :  { %p6719_p5 = por %p6718_p4, %p6717_p3 }
  0x4e   :  { %p6720_p6 = pnand %p6719_p5, %p6713_p2 }
  0x50   :  { %6723 = shalt.err (!%p6720_p6)
}
  0x51   :  { %85 = dma.hbm_to_vmem [thread:$0]  %s7909_s6, 512, %s80_s27, [#allocation9], %s6823_s7, %s6823_s7, %s6824_s22  }
  0x52   :  { %s6827_s17 = smov [#allocation13]   ;;  %s6828_s16 = smov [#allocation16]  }
  0x53   :  { %s101_s5 = sshll.u32 %s6827_s17, 4  ;;  %s123_s4 = sshll.u32 %s6828_s16, 4  ;;  %s102_s5 = int_to_ptr.vmem [resolvable:$true] %s101_s5  ;;  %s124_s4 = int_to_ptr.vmem [resolvable:$true] %s123_s4 }
  0x54   :  { %s6732_s18 = scalar_lea.vmem %s102_s5, 512  ;;  %p6737_p8 = scmp.lt.s32.totalorder %s102_s5, %s102_s5 }
  0x55   :  { %p6733_p7 = scmp.ne.s32.totalorder %s102_s5, %s6732_s18  ;;  %p6738_p9 = scmp.lt.s32.totalorder %s6732_s18, %s6732_s18 }
  0x57   :  { %p6739_p10 = por %p6738_p9, %p6737_p8 }
  0x59   :  { %p6740_p11 = pnand %p6739_p10, %p6733_p7 }
  0x5b   :  { %6743 = shalt.err (!%p6740_p11)
}
  0x5c   :  { %107 = dma.hbm_to_vmem [thread:$0]  %s7911_s8, 512, %s102_s5, [#allocation12], %s6823_s7, %s6823_s7, %s6824_s22  }
  0x5d   :  { %s6752_s6 = scalar_lea.vmem %s124_s4, 512  ;;  %p6757_p13 = scmp.lt.s32.totalorder %s124_s4, %s124_s4 }
  0x5e   :  { %p6753_p12 = scmp.ne.s32.totalorder %s124_s4, %s6752_s6  ;;  %p6758_p0 = scmp.lt.s32.totalorder %s6752_s6, %s6752_s6 }
  0x60   :  { %p6759_p1 = por %p6758_p0, %p6757_p13 }
  0x62   :  { %p6760_p2 = pnand %p6759_p1, %p6753_p12 }
  0x64   :  { %6763 = shalt.err (!%p6760_p2)
}
  0x65   :  { %129 = dma.hbm_to_vmem [thread:$0]  %s7913_s10, 512, %s124_s4, [#allocation15], %s6823_s7, %s6823_s7, %s6824_s22  }
  0x66   :  { %s6829_s24 = smov [#allocation17]  }
  0x67   :  { %s136_s9 = sshll.u32 %s6829_s24, 4  ;;  %s137_s9 = int_to_ptr.vmem [resolvable:$true] %s136_s9 }
  0x68   :  { %s6772_s25 = scalar_lea.vmem %s137_s9, 16  ;;  %s6776_s8 = scalar_lea.vmem %s137_s9, 32 }
  0x69   :  { %p6773_p3 = scmp.ne.s32.totalorder %s137_s9, %s6772_s25  ;;  %p6777_p4 = scmp.lt.s32.totalorder %s137_s9, %s137_s9 }
  0x6a   :  { %p6778_p5 = scmp.lt.s32.totalorder %s6776_s8, %s6772_s25 }
  0x6c   :  { %p6779_p6 = por %p6778_p5, %p6777_p4 }
  0x6e   :  { %p6780_p7 = pnand %p6779_p6, %p6773_p3 }
  0x70   :  { %6783 = shalt.err (!%p6780_p7)
}
  0x71   :  { %139 = dma.hbm_to_vmem [thread:$0]  %s7914_s11, 16, %s137_s9, [#allocation18]  }
  0x72   :  { %6804 = dma.done.wait [#allocation3], 256  }
  0x73   :  { %6805 = vsyncadd [#allocation3], 4294967040 }
  0x74   :  { %6806 = dma.done.wait [#allocation6], 528  }
  0x75   :  { %6807 = vsyncadd [#allocation6], 4294966768 }
  0x76   :  { %6808 = dma.done.wait [#allocation9], 528  }
  0x77   :  { %6809 = vsyncadd [#allocation9], 4294966768 }
  0x78   :  { %6810 = dma.done.wait [#allocation12], 528  }
  0x79   :  { %6811 = vsyncadd [#allocation12], 4294966768 }
  0x7a   :  { %6812 = dma.done.wait [#allocation15], 528  }
  0x7b   :  { %6813 = vsyncadd [#allocation15], 4294966768 }
  0x7c   :  { %6814 = dma.done.wait [#allocation18], 16  }
  0x7d   :  { %6815 = vsyncadd [#allocation18], 4294967280  ;;  %v7918_v0 = vmov 0.0   ;;  %vm6831_vm0 = vmmov 0   ;;  %vm201_vm1 = vcmask 261120   ;;  %v183_v1 = vld [vmem:[#allocation7 + $0x18] sm:$0xff] }
  0x7e   :  { %5904 = vmatprep.subr.mxu0 %v7918_v0  ;;  %5915 = vmatprep.subr.mxu1 %v7918_v0  ;;  %v182_v2 = vld [vmem:[#allocation7 + $0x10] sm:$0xff]  ;;  %v181_v3 = vld [vmem:[#allocation7 + $0x8] sm:$0xff]  ;;  %v6960_v4 = vand.u32 4294901760, %v183_v1  ;;  %v180_v7 = vld [vmem:[#allocation7] sm:$0xff]  ;;  %vm2201_vm2 = vcmask 1043456   ;;  %vm2178_vm3 = vcmask 31744  }
  0x7f   :  { %5912 = vmatprep.mubr.msk.f32.mxu0 %vm6831_vm0, %v7918_v0  ;;  %5923 = vmatprep.mubr.msk.f32.mxu1 %vm6831_vm0, %v7918_v0  ;;  %v6962_v5 = vand.u32 4294901760, %v182_v2  ;;  %v6964_v6 = vand.u32 4294901760, %v181_v3  ;;  %v200_v8 = vld [vmem:[#allocation5] sm:$0x1]  ;;  %v6966_v9 = vand.u32 4294901760, %v180_v7  ;;  %v174_v31 = vld [vmem:[%s7905_s2] sm:$0xff] }
  0x80   :  { %v203_v10 = vsel %vm201_vm1, %v200_v8, 0  ;;  %5905 = vmatpush3.msra.mxu0 %v6960_v4  ;;  %v310_v11 = vsub.f32 %v183_v1, %v6960_v4  ;;  %v691_v32 = vld [vmem:[#allocation2] sm:$0xff]  ;;  %v187_v35 = vld [vmem:[#allocation10 + $0x18] sm:$0xff]  ;;  %v184_v42 = vld [vmem:[#allocation10] sm:$0xff]  ;;  %vm3147_vm4 = vcmask 253952  }
  0x81   :  { %v6971_v12 = vand.u32 4294901760, %v203_v10  ;;  %v6974_v13 = vsub.f32 %v182_v2, %v6962_v5  ;;  %v6977_v14 = vsub.f32 %v181_v3, %v6964_v6  ;;  %5906 = vmatprep.subr.mxu0 %v7918_v0  ;;  %v6981_v15 = vsub.f32 %v180_v7, %v6966_v9  ;;  %v186_v38 = vld [vmem:[#allocation10 + $0x10] sm:$0xff]  ;;  %v185_v39 = vld [vmem:[#allocation10 + $0x8] sm:$0xff]  ;;  %v191_v2 = vld [vmem:[#allocation13 + $0x18] sm:$0xff] }
  0x82   :  { %5907 = vmatpush3.msra.mxu0 %v6962_v5  ;;  %v311_v16 = vand.u32 4294901760, %v310_v11  ;;  %v692_v34 = vadd.f32 %v691_v32, %v174_v31  ;;  %v7020_v37 = vand.u32 4294901760, %v187_v35  ;;  %v7030_v41 = vand.u32 4294901760, %v186_v38  ;;  %v189_v7 = vld [vmem:[#allocation13 + $0x8] sm:$0xff]  ;;  %v176_v31 = vld [vmem:[%s7915_s12 + $0x8] sm:$0xff] }
  0x83   :  { %v6985_v17 = vsub.f32 %v203_v10, %v6971_v12  ;;  %v318_v18 = vand.u32 4294901760, %v6974_v13  ;;  %v325_v19 = vand.u32 4294901760, %v6977_v14  ;;  %5908 = vmatprep.subr.mxu0 %v7918_v0  ;;  %v332_v20 = vand.u32 4294901760, %v6981_v15 }
  0x84   :  { %5909 = vmatpush3.msra.mxu0 %v6964_v6  ;;  %v312_v21 = vsub.f32 %v310_v11, %v311_v16  ;;  %v700_v36 = vsel %vm201_vm1, %v692_v34, 0  ;;  %v7035_v43 = vsub.f32 %v187_v35, %v7020_v37  ;;  %v7038_v44 = vand.u32 4294901760, %v185_v39  ;;  %v175_v35 = vld [vmem:[%s7915_s12] sm:$0xff] }
  0x85   :  { %v276_v22 = vand.u32 4294901760, %v6985_v17  ;;  %v319_v23 = vsub.f32 %v6974_v13, %v318_v18  ;;  %v326_v24 = vsub.f32 %v6977_v14, %v325_v19  ;;  %5910 = vmatprep.subr.mxu0 %v7918_v0  ;;  %v333_v28 = vsub.f32 %v6981_v15, %v332_v20 }
  0x86   :  { %5911 = vmatpush3.msra.mxu0 %v6966_v9  ;;  %v313_v25 = vand.u32 4294901760, %v312_v21  ;;  %v7027_v40 = vand.u32 4294901760, %v700_v36  ;;  %v7048_v46 = vand.u32 4294901760, %v184_v42  ;;  %v7051_v47 = vsub.f32 %v186_v38, %v7030_v41 }
  0x87   :  { %v277_v26 = vsub.f32 %v6985_v17, %v276_v22  ;;  %v320_v27 = vand.u32 4294901760, %v319_v23  ;;  %5926 = vmatprep.subr.mxu0 %v7918_v0  ;;  %v327_v30 = vand.u32 4294901760, %v326_v24  ;;  %v334_v33 = vand.u32 4294901760, %v333_v28  ;;  %v177_v28 = vld [vmem:[%s7915_s12 + $0x10] sm:$0xff] }
  0x88   :  { %5916 = vmatpush3.msra.mxu1 %v313_v25  ;;  %v7043_v45 = vsub.f32 %v700_v36, %v7027_v40  ;;  %v7056_v48 = vand.u32 4294901760, %v7035_v43  ;;  %v7061_v49 = vsub.f32 %v185_v39, %v7038_v44  ;;  %v7073_v51 = vand.u32 4294901760, %v7051_v47 }
  0x89   :  { %v278_v29 = vand.u32 4294901760, %v277_v26  ;;  %5917 = vmatprep.subr.mxu1 %v7918_v0  ;;  %v7076_v52 = vsub.f32 %v184_v42, %v7048_v46  ;;  %v7185_v3 = vand.u32 4294901760, %v191_v2  ;;  %v7201_v10 = vand.u32 4294901760, %v189_v7  ;;  %v178_v26 = vld [vmem:[%s7915_s12 + $0x18] sm:$0xff] }
  0x8a   :  { %5918 = vmatpush3.msra.mxu1 %v320_v27  ;;  %v7068_v50 = vand.u32 4294901760, %v7043_v45  ;;  %v809_v53 = vsub.f32 %v7035_v43, %v7056_v48  ;;  %v7085_v54 = vand.u32 4294901760, %v7061_v49  ;;  %v816_v56 = vsub.f32 %v7051_v47, %v7073_v51 }
  0x8b   :  { %5913 = vmatmul.mubr.f32.vlgmr.msra.gmra.mxu0 %v278_v29  ;;  %5919 = vmatprep.subr.mxu1 %v7918_v0  ;;  %v7096_v57 = vand.u32 4294901760, %v7076_v52  ;;  %v7277_v27 = vand.u32 4294901760, %v178_v26  ;;  %v7304_v34 = vand.u32 4294901760, %v176_v31  ;;  %v7322_v42 = vand.u32 4294901760, %v175_v35 }
  0x8c   :  { %5927 = vmatpush3.msra.mxu0 %v310_v11  ;;  %5920 = vmatpush3.msra.mxu1 %v327_v30  ;;  %v774_v55 = vsub.f32 %v7043_v45, %v7068_v50  ;;  %v7100_v58 = vand.u32 4294901760, %v809_v53  ;;  %v823_v59 = vsub.f32 %v7061_v49, %v7085_v54  ;;  %v7113_v61 = vand.u32 4294901760, %v816_v56  ;;  %v188_v11 = vld [vmem:[#allocation13] sm:$0xff] }
  0x8d   :  { %5928 = vmatprep.subr.mxu0 %v7918_v0  ;;  %5921 = vmatprep.subr.mxu1 %v7918_v0  ;;  %v830_v62 = vsub.f32 %v7076_v52, %v7096_v57  ;;  %v7287_v29 = vsub.f32 %v178_v26, %v7277_v27  ;;  %v7289_v30 = vand.u32 4294901760, %v177_v28  ;;  %v7320_v39 = vsub.f32 %v176_v31, %v7304_v34 }
  0x8e   :  { %5929 = vmatpush3.msra.mxu0 %v6974_v13  ;;  %5922 = vmatpush3.msra.mxu1 %v334_v33  ;;  %v7109_v60 = vand.u32 4294901760, %v774_v55  ;;  %v7122_v63 = vand.u32 4294901760, %v823_v59  ;;  %v7337_v55 = vsub.f32 %v175_v35, %v7322_v42 }
  0x8f   :  { %5930 = vmatprep.subr.mxu0 %v7918_v0  ;;  %5924 = vmatmul.mubr.f32.vlgmr.msra.gmra.mxu1 %v6971_v12  ;;  %v7128_v1 = vand.u32 4294901760, %v830_v62  ;;  %7960 = vst [vmem:[#allocation35_spill] sm:$0xff] %v7287_v29  ;;  %v7299_v32 = vand.u32 4294901760, %v7287_v29  ;;  %v7302_v33 = vsub.f32 %v177_v28, %v7289_v30  ;;  %7964 = vst [vmem:[#allocation39_spill] sm:$0xff] %v7320_v39  ;;  %v7334_v53 = vand.u32 4294901760, %v7320_v39 }
  0x90   :  { %5931 = vmatpush3.msra.mxu0 %v6977_v14  ;;  %5937 = vmatprep.subr.mxu1 %v7918_v0  ;;  %v7210_v14 = vsub.f32 %v189_v7, %v7201_v10  ;;  %7967 = vst [vmem:[#allocation42_spill] sm:$0xff] %v7337_v55  ;;  %v5609_v7 = vld [vmem:[%s7904_s1 + $0x8] sm:$0xff] }
  0x91   :  { %5932 = vmatprep.subr.mxu0 %v7918_v0  ;;  %5938 = vmatpush3.msra.mxu1 %v6960_v4  ;;  %7961 = vst [vmem:[#allocation36_spill] sm:$0xff] %v7299_v32  ;;  %7962 = vst [vmem:[#allocation37_spill] sm:$0xff] %v7302_v33  ;;  %v1800_v36 = vsub.f32 %v7287_v29, %v7299_v32  ;;  %v7317_v38 = vand.u32 4294901760, %v7302_v33  ;;  %v1814_v59 = vsub.f32 %v7320_v39, %v7334_v53 }
  0x92   :  { %5933 = vmatpush3.msra.mxu0 %v6981_v15  ;;  %5934 = vmatprep.mubr.msk.f32.mxu0 %vm6831_vm0, %v7918_v0  ;;  %7956 = vst [vmem:[#allocation31_spill] sm:$0xff] %v7210_v14  ;;  %v7213_v15 = vand.u32 4294901760, %v188_v11  ;;  %7966 = vst [vmem:[#allocation41_spill] sm:$0xff] %v7334_v53 }
  0x93   :  { %5939 = vmatprep.subr.mxu1 %v7918_v0  ;;  %5948 = vmatprep.subr.mxu0 %v7918_v0  ;;  %7963 = vst [vmem:[#allocation38_spill] sm:$0xff] %v7317_v38 }
  0x94   :  { %5935 = vmatmul.mubr.f32.vlgmr.msra.gmra.mxu0 %v6985_v17  ;;  %5940 = vmatpush3.msra.mxu1 %v6962_v5 }
  0x95   :  { %5949 = vmatpush3.msra.mxu0 %v311_v16  ;;  %5941 = vmatprep.subr.mxu1 %v7918_v0 }
  0x96   :  { %5950 = vmatprep.subr.mxu0 %v7918_v0  ;;  %5942 = vmatpush3.msra.mxu1 %v6964_v6 }
  0x97   :  { %5951 = vmatpush3.msra.mxu0 %v318_v18  ;;  %5943 = vmatprep.subr.mxu1 %v7918_v0  ;;  %v7221_v18 = vand.u32 4294901760, %v7210_v14 }
  0x98   :  { %5952 = vmatprep.subr.mxu0 %v7918_v0  ;;  %5944 = vmatpush3.msra.mxu1 %v6966_v9 }
  0x99   :  { %5945 = vmatprep.mubr.msk.f32.mxu1 %vm6831_vm0, %v7918_v0  ;;  %5953 = vmatpush3.msra.mxu0 %v325_v19  ;;  %7957 = vst [vmem:[#allocation32_spill] sm:$0xff] %v7221_v18  ;;  %v7224_v19 = vsub.f32 %v188_v11, %v7213_v15  ;;  %v1314_v21 = vsub.f32 %v7210_v14, %v7221_v18  ;;  %v6832_v11 = vmov 0  }
  0x9a   :  { %5946 = vmatmul.mubr.f32.vlgmr.msra.gmra.mxu1 %v276_v22  ;;  %5954 = vmatprep.subr.mxu0 %v7918_v0 }
  0x9b   :  { %5959 = vmatprep.subr.mxu1 %v7918_v0  ;;  %5955 = vmatpush3.msra.mxu0 %v332_v20  ;;  %7958 = vst [vmem:[#allocation33_spill] sm:$0xff] %v7224_v19  ;;  %v7235_v22 = vand.u32 4294901760, %v7224_v19  ;;  %v7241_v23 = vand.u32 4294901760, %v1314_v21 }
  0x9c   :  { %5956 = vmatprep.mubr.msk.f32.mxu0 %vm6831_vm0, %v7918_v0  ;;  %5960 = vmatpush3.msra.mxu1 %v6960_v4  ;;  %v190_v4 = vld [vmem:[#allocation13 + $0x10] sm:$0xff] }
  0x9d   :  { %5957 = vmatmul.mubr.f32.vlgmr.msra.gmra.mxu0 %v6971_v12  ;;  %5961 = vmatprep.subr.mxu1 %v7918_v0  ;;  %7959 = vst [vmem:[#allocation34_spill] sm:$0xff] %v7235_v22  ;;  %v1321_v24 = vsub.f32 %v7224_v19, %v7235_v22 }
  0x9e   :  { %5970 = vmatprep.subr.mxu0 %v7918_v0  ;;  %5962 = vmatpush3.msra.mxu1 %v6962_v5  ;;  %v7188_v5 = vsub.f32 %v191_v2, %v7185_v3 }
  0x9f   :  { %5971 = vmatpush3.msra.mxu0 %v7020_v37  ;;  %5963 = vmatprep.subr.mxu1 %v7918_v0  ;;  %v7249_v25 = vand.u32 4294901760, %v1321_v24 }
  0xa0   :  { %5972 = vmatprep.subr.mxu0 %v7918_v0  ;;  %5964 = vmatpush3.msra.mxu1 %v6964_v6  ;;  %7952 = vst [vmem:[#allocation27_spill] sm:$0xff] %v7188_v5  ;;  %v7191_v6 = vand.u32 4294901760, %v190_v4  ;;  %v7195_v8 = vand.u32 4294901760, %v7188_v5 }
  0xa1   :  { %5973 = vmatpush3.msra.mxu0 %v7030_v41  ;;  %5965 = vmatprep.subr.mxu1 %v7918_v0 }
  0xa2   :  { %5974 = vmatprep.subr.mxu0 %v7918_v0  ;;  %5966 = vmatpush3.msra.mxu1 %v6966_v9  ;;  %7953 = vst [vmem:[#allocation28_spill] sm:$0xff] %v7195_v8  ;;  %v7198_v9 = vsub.f32 %v190_v4, %v7191_v6  ;;  %v1683_v4 = vld [vmem:[%s7904_s1] sm:$0xff] }
  0xa3   :  { %5967 = vmatprep.mubr.msk.f32.mxu1 %vm6831_vm0, %v7918_v0  ;;  %5975 = vmatpush3.msra.mxu0 %v7038_v44 }
  0xa4   :  { %5968 = vmatmul.mubr.f32.vlgmr.msra.gmra.mxu1 %v6971_v12  ;;  %5976 = vmatprep.subr.mxu0 %v7918_v0  ;;  %7954 = vst [vmem:[#allocation29_spill] sm:$0xff] %v7198_v9  ;;  %v1300_v12 = vsub.f32 %v7188_v5, %v7195_v8  ;;  %v7207_v13 = vand.u32 4294901760, %v7198_v9 }
  0xa5   :  { %5981 = vmatprep.subr.mxu1 %v7918_v0  ;;  %5977 = vmatpush3.msra.mxu0 %v7048_v46 }
  0xa6   :  { %5982 = vmatpush3.msra.mxu1 %v7100_v58  ;;  %5978 = vmatprep.mubr.msk.f32.mxu0 %vm6831_vm0, %v7918_v0  ;;  %7955 = vst [vmem:[#allocation30_spill] sm:$0xff] %v7207_v13  ;;  %v7216_v16 = vand.u32 4294901760, %v1300_v12  ;;  %v1307_v17 = vsub.f32 %v7198_v9, %v7207_v13  ;;  %v1684_v12 = vmul.f32 -1e+30, %v1683_v4 }
  0xa7   :  { %5983 = vmatprep.subr.mxu1 %v7918_v0  ;;  %5992 = vmatprep.subr.mxu0 %v7918_v0 }
  0xa8   :  { %5979 = vmatmul.mubr.f32.vlgmr.msra.gmra.mxu0 %v7109_v60  ;;  %5984 = vmatpush3.msra.mxu1 %v7113_v61  ;;  %v7230_v20 = vand.u32 4294901760, %v1307_v17  ;;  %v4128_v17 = vmul.f32 -1e+30, %v5609_v7  ;;  %v7381_v7 = vld [vmem:[#allocation11] ss:$0 sm:$0xff] }
  0xa9   :  { %5993 = vmatpush3.msra.mxu0 %v7035_v43  ;;  %5985 = vmatprep.subr.mxu1 %v7918_v0  ;;  %7972 = vst [vmem:[#allocation47_spill] sm:$0xff] %v7381_v7 }
  0xaa   :  { %5994 = vmatprep.subr.mxu0 %v7918_v0  ;;  %5986 = vmatpush3.msra.mxu1 %v7122_v63 }
  0xab   :  { %5995 = vmatpush3.msra.mxu0 %v7051_v47  ;;  %5987 = vmatprep.subr.mxu1 %v7918_v0 }
  0xac   :  { %5996 = vmatprep.subr.mxu0 %v7918_v0  ;;  %5988 = vmatpush3.msra.mxu1 %v7128_v1 }
  0xad   :  { %5989 = vmatprep.mubr.msk.f32.mxu1 %vm6831_vm0, %v7918_v0  ;;  %5997 = vmatpush3.msra.mxu0 %v7061_v49 }
  0xae   :  { %5990 = vmatmul.mubr.f32.vlgmr.msra.gmra.mxu1 %v7027_v40  ;;  %5998 = vmatprep.subr.mxu0 %v7918_v0 }
  0xaf   :  { %6003 = vmatprep.subr.mxu1 %v7918_v0  ;;  %5999 = vmatpush3.msra.mxu0 %v7076_v52 }
  0xb0   :  { %6004 = vmatpush3.msra.mxu1 %v7020_v37  ;;  %6000 = vmatprep.mubr.msk.f32.mxu0 %vm6831_vm0, %v7918_v0 }
  0xb1   :  { %6005 = vmatprep.subr.mxu1 %v7918_v0  ;;  %6014 = vmatprep.subr.mxu0 %v7918_v0 }
  0xb2   :  { %6001 = vmatmul.mubr.f32.vlgmr.msra.gmra.mxu0 %v7043_v45  ;;  %6006 = vmatpush3.msra.mxu1 %v7030_v41 }
  0xb3   :  { %6015 = vmatpush3.msra.mxu0 %v7056_v48  ;;  %6007 = vmatprep.subr.mxu1 %v7918_v0 }
  0xb4   :  { %6016 = vmatprep.subr.mxu0 %v7918_v0  ;;  %6008 = vmatpush3.msra.mxu1 %v7038_v44 }
  0xb5   :  { %6017 = vmatpush3.msra.mxu0 %v7073_v51  ;;  %6009 = vmatprep.subr.mxu1 %v7918_v0 }
  0xb6   :  { %6018 = vmatprep.subr.mxu0 %v7918_v0  ;;  %6010 = vmatpush3.msra.mxu1 %v7048_v46 }
  0xb7   :  { %6011 = vmatprep.mubr.msk.f32.mxu1 %vm6831_vm0, %v7918_v0  ;;  %6019 = vmatpush3.msra.mxu0 %v7085_v54 }
  0xb8   :  { %6012 = vmatmul.mubr.f32.vlgmr.msra.gmra.mxu1 %v7068_v50  ;;  %6020 = vmatprep.subr.mxu0 %v7918_v0 }
  0xb9   :  { %6025 = vmatprep.subr.mxu1 %v7918_v0  ;;  %6021 = vmatpush3.msra.mxu0 %v7096_v57 }
  0xba   :  { %6022 = vmatprep.mubr.msk.f32.mxu0 %vm6831_vm0, %v7918_v0  ;;  %6026 = vmatpush3.msra.mxu1 %v7020_v37 }
  0xbb   :  { %6023 = vmatmul.mubr.f32.vlgmr.msra.gmra.mxu0 %v7027_v40  ;;  %6027 = vmatprep.subr.mxu1 %v7918_v0 }
  0xbc   :  { %6033 = vmatprep.mubr.msk.f32.mxu1 %vm6831_vm0, %v7918_v0  ;;  %6028 = vmatpush3.msra.mxu1 %v7030_v41 }
  0xbd   :  { %6036 = vmatprep.subr.mxu0 %v7918_v0  ;;  %6029 = vmatprep.subr.mxu1 %v7918_v0 }
  0xbe   :  { %6044 = vmatprep.mubr.msk.f32.mxu0 %vm6831_vm0, %v7918_v0  ;;  %6030 = vmatpush3.msra.mxu1 %v7038_v44 }
  0xbf   :  { %6031 = vmatprep.subr.mxu1 %v7918_v0  ;;  %6037 = vmatpush3.msra.mxu0 %v7185_v3 }
  0xc0   :  { %6032 = vmatpush3.msra.mxu1 %v7048_v46  ;;  %6038 = vmatprep.subr.mxu0 %v7918_v0 }
  0xc1   :  { %6034 = vmatmul.mubr.f32.vlgmr.msra.gmra.mxu1 %v7027_v40  ;;  %6047 = vmatprep.subr.mxu1 %v7918_v0 }
  0xc2   :  { %6055 = vmatprep.mubr.msk.f32.mxu1 %vm6831_vm0, %v7918_v0  ;;  %6039 = vmatpush3.msra.mxu0 %v7191_v6 }
  0xc3   :  { %6040 = vmatprep.subr.mxu0 %v7918_v0  ;;  %6048 = vmatpush3.msra.mxu1 %v7216_v16 }
  0xc4   :  { %6041 = vmatpush3.msra.mxu0 %v7201_v10  ;;  %6049 = vmatprep.subr.mxu1 %v7918_v0 }
  0xc5   :  { %6042 = vmatprep.subr.mxu0 %v7918_v0  ;;  %6050 = vmatpush3.msra.mxu1 %v7230_v20 }
  0xc6   :  { %6043 = vmatpush3.msra.mxu0 %v7213_v15  ;;  %6051 = vmatprep.subr.mxu1 %v7918_v0 }
  0xc7   :  { %6058 = vmatprep.subr.mxu0 %v7918_v0  ;;  %6045 = vmatmul.mubr.f32.vlgmr.msra.gmra.mxu0 %v7109_v60  ;;  %v7347_v60 = vand.u32 4294901760, %v7337_v55 }
  0xc8   :  { %6059 = vmatpush3.msra.mxu0 %v7188_v5  ;;  %6052 = vmatpush3.msra.mxu1 %v7241_v23 }
  0xc9   :  { %6060 = vmatprep.subr.mxu0 %v7918_v0  ;;  %6053 = vmatprep.subr.mxu1 %v7918_v0  ;;  %7969 = vst [vmem:[#allocation44_spill] sm:$0xff] %v7347_v60  ;;  %v1821_v62 = vsub.f32 %v7337_v55, %v7347_v60 }
  0xca   :  { %6061 = vmatpush3.msra.mxu0 %v7198_v9  ;;  %6054 = vmatpush3.msra.mxu1 %v7249_v25 }
  0xcb   :  { %6062 = vmatprep.subr.mxu0 %v7918_v0  ;;  %6069 = vmatprep.subr.mxu1 %v7918_v0  ;;  %v7362_v2 = vand.u32 4294901760, %v1821_v62 }
  0xcc   :  { %6063 = vmatpush3.msra.mxu0 %v7210_v14  ;;  %6056 = vmatmul.mubr.f32.vlgmr.msra.gmra.mxu1 %v7027_v40 }
  0xcd   :  { %6064 = vmatprep.subr.mxu0 %v7918_v0  ;;  %6070 = vmatpush3.msra.mxu1 %v7185_v3  ;;  %7971 = vst [vmem:[#allocation46_spill] sm:$0xff] %v7362_v2 }
  0xce   :  { %6065 = vmatpush3.msra.mxu0 %v7224_v19  ;;  %6077 = vmatprep.mubr.msk.f32.mxu1 %vm6831_vm0, %v7918_v0 }
  0xcf   :  { %6071 = vmatprep.subr.mxu1 %v7918_v0  ;;  %6066 = vmatprep.mubr.msk.f32.mxu0 %vm6831_vm0, %v7918_v0 }
  0xd0   :  { %6072 = vmatpush3.msra.mxu1 %v7191_v6  ;;  %6080 = vmatprep.subr.mxu0 %v7918_v0 }
  0xd1   :  { %6073 = vmatprep.subr.mxu1 %v7918_v0  ;;  %6067 = vmatmul.mubr.f32.vlgmr.msra.gmra.mxu0 %v7043_v45  ;;  %v7329_v45 = vand.u32 4294901760, %v1800_v36 }
  0xd2   :  { %6074 = vmatpush3.msra.mxu1 %v7201_v10  ;;  %6081 = vmatpush3.msra.mxu0 %v7195_v8 }
  0xd3   :  { %6075 = vmatprep.subr.mxu1 %v7918_v0  ;;  %6082 = vmatprep.subr.mxu0 %v7918_v0  ;;  %7965 = vst [vmem:[#allocation40_spill] sm:$0xff] %v7329_v45 }
  0xd4   :  { %6076 = vmatpush3.msra.mxu1 %v7213_v15  ;;  %6083 = vmatpush3.msra.mxu0 %v7207_v13 }
  0xd5   :  { %6091 = vmatprep.subr.mxu1 %v7918_v0  ;;  %6078 = vmatmul.mubr.f32.vlgmr.msra.gmra.mxu1 %v7068_v50  ;;  %v1807_v50 = vsub.f32 %v7302_v33, %v7317_v38 }
  0xd6   :  { %6092 = vmatpush3.msra.mxu1 %v7185_v3  ;;  %6084 = vmatprep.subr.mxu0 %v7918_v0 }
  0xd7   :  { %6093 = vmatprep.subr.mxu1 %v7918_v0  ;;  %6085 = vmatpush3.msra.mxu0 %v7221_v18  ;;  %v7342_v56 = vand.u32 4294901760, %v1807_v50 }
  0xd8   :  { %6094 = vmatpush3.msra.mxu1 %v7191_v6  ;;  %6086 = vmatprep.subr.mxu0 %v7918_v0 }
  0xd9   :  { %6095 = vmatprep.subr.mxu1 %v7918_v0  ;;  %6087 = vmatpush3.msra.mxu0 %v7235_v22  ;;  %7968 = vst [vmem:[#allocation43_spill] sm:$0xff] %v7342_v56 }
  0xda   :  { %6096 = vmatpush3.msra.mxu1 %v7201_v10  ;;  %6088 = vmatprep.mubr.msk.f32.mxu0 %vm6831_vm0, %v7918_v0 }
  0xdb   :  { %6097 = vmatprep.subr.mxu1 %v7918_v0  ;;  %6099 = vmatprep.mubr.msk.f32.mxu1 %vm6831_vm0, %v7918_v0 }
  0xdc   :  { %6098 = vmatpush3.msra.mxu1 %v7213_v15  ;;  %6089 = vmatmul.mubr.f32.vlgmr.msra.gmra.mxu0 %v7027_v40 }
  0xdd   :  { %6113 = vmatprep.subr.mxu1 %v7918_v0  ;;  %6100 = vmatmul.mubr.f32.vlgmr.msra.gmra.mxu1 %v7027_v40  ;;  %v7354_v40 = vand.u32 4294901760, %v1814_v59 }
  0xde   :  { %6114 = vmatpush3.msra.mxu1 %v7329_v45  ;;  %6102 = vmatprep.subr.mxu0 %v7918_v0 }
  0xdf   :  { %6115 = vmatprep.subr.mxu1 %v7918_v0  ;;  %6121 = vmatprep.mubr.msk.f32.mxu1 %vm6831_vm0, %v7918_v0  ;;  %7970 = vst [vmem:[#allocation45_spill] sm:$0xff] %v7354_v40 }
  0xe0   :  { %6116 = vmatpush3.msra.mxu1 %v7342_v56  ;;  %6103 = vmatpush3.msra.mxu0 %v7277_v27 }
  0xe1   :  { %6117 = vmatprep.subr.mxu1 %v7918_v0  ;;  %6104 = vmatprep.subr.mxu0 %v7918_v0 }
  0xe2   :  { %6118 = vmatpush3.msra.mxu1 %v7354_v40  ;;  %6105 = vmatpush3.msra.mxu0 %v7289_v30  ;;  %v196_v40 = vld [vmem:[#allocation8] sm:$0x1] }
  0xe3   :  { %6119 = vmatprep.subr.mxu1 %v7918_v0  ;;  %6106 = vmatprep.subr.mxu0 %v7918_v0 }
  0xe4   :  { %6120 = vmatpush3.msra.mxu1 %v7362_v2  ;;  %6107 = vmatpush3.msra.mxu0 %v7304_v34 }
  0xe5   :  { %6135 = vmatprep.subr.mxu1 %v7918_v0  ;;  %6108 = vmatprep.subr.mxu0 %v7918_v0 }
  0xe6   :  { %6109 = vmatpush3.msra.mxu0 %v7322_v42  ;;  %6110 = vmatprep.mubr.msk.f32.mxu0 %vm6831_vm0, %v7918_v0 }
  0xe7   :  { %6124 = vmatprep.subr.mxu0 %v7918_v0  ;;  %6574 = vset.pattern.permute.xlu0 %v6832_v11 }
  0xe8   :  { %1687 = vperm.xlu0 %6574, %v1684_v12  }
  0xec   :  { %4131 = vperm.xlu0 %6574, %v4128_v17  }
 0x14b   :  { %v280_v21 = vpop.f32.mrf.mxu0 }
 0x14c   :  { %v281_v11 = vadd.f32 %v280_v21, %v196_v40 }
 0x14d   :  { %v5914_v24 = vpop.f32.mrf.mxu0 }
 0x14f   :  { %v371_v26 = vpop.f32.mrf.mxu1 }
 0x150   :  { %v372_v12 = vadd.f32 %v371_v26, %v281_v11 }
 0x151   :  { %v5925_v28 = vpop.f32.mrf.mxu1 }
 0x154   :  { %v451_v31 = vpop.f32.mrf.mxu0 }
 0x155   :  { %v452_v22 = vadd.f32 %v451_v31, %v372_v12 }
 0x156   :  { %v5936_v35 = vpop.f32.mrf.mxu0 }
 0x15a   :  { %v528_v36 = vpop.f32.mrf.mxu1 }
 0x15b   :  { %v529_v18 = vadd.f32 %v528_v36, %v452_v22 }
 0x15c   :  { %v5947_v50 = vpop.f32.mrf.mxu1 }
 0x15d   :  { %v611_v59 = vpop.f32.mrf.mxu0  ;;  %v1678_v50 = vlaneseq }
 0x15e   :  { %v612_v8 = vadd.f32 %v611_v59, %v529_v18 }
 0x15f   :  { %v5958_v62 = vpop.f32.mrf.mxu0  ;;  %v1679_v14 = vshrl.u32 %v1678_v50, 7 }
 0x161   :  { %v1680_v9 = vsub.s32 0, %v1679_v14  ;;  %v7432_v14 = vld [vmem:[#allocation14] ss:$0 sm:$0xff] }
 0x162   :  { %7975 = vst [vmem:[#allocation49_spill] sm:$0xff] %v7432_v14 }
 0x164   :  { %v686_v0 = vpop.f32.mrf.mxu1 }
 0x165   :  { %v687_v19 = vadd.f32 %v686_v0, %v612_v8  ;;  %v7974_v0 = vmov 0.0  }
 0x166   :  { %v5969_v2 = vpop.f32.mrf.mxu1 }
 0x167   :  { %v690_v11 = vmul.f32 0.35355338, %v687_v19 }
 0x168   :  { %v777_v56 = vpop.f32.mrf.mxu0 }
 0x169   :  { %v778_v28 = vadd.f32 %v7381_v7, %v777_v56  ;;  %v7384_v31 = vrot.slane %v690_v11, %v1680_v9 }
 0x16a   :  { %v5980_v45 = vpop.f32.mrf.mxu0 }
 0x16b   :  { %7973 = vst [vmem:[#allocation48_spill] sm:$0xff] %v7384_v31 }
 0x16e   :  { %v868_v4 = vpop.f32.mrf.mxu1 }
 0x16f   :  { %v869_v13 = vadd.f32 %v868_v4, %v778_v28 }
 0x170   :  { %v5991_v17 = vpop.f32.mrf.mxu1 }
 0x172   :  { %v948_v24 = vpop.f32.mrf.mxu0 }
 0x173   :  { %v949_v45 = vadd.f32 %v948_v24, %v869_v13 }
 0x174   :  { %v6002_v35 = vpop.f32.mrf.mxu0 }
 0x178   :  { %v1025_v62 = vpop.f32.mrf.mxu1 }
 0x179   :  { %v1026_v21 = vadd.f32 %v1025_v62, %v949_v45 }
 0x17a   :  { %v6013_v2 = vpop.f32.mrf.mxu1 }
 0x17b   :  { %v1108_v40 = vpop.f32.mrf.mxu0 }
 0x17c   :  { %v1109_v17 = vadd.f32 %v1108_v40, %v1026_v21 }
 0x17d   :  { %v6024_v26 = vpop.f32.mrf.mxu0 }
 0x181   :  { %v1183_v5 = vpop.f32.mrf.mxu1 }
 0x182   :  { %v1184_v56 = vadd.f32 %v1183_v5, %v1109_v17 }
 0x183   :  { %v6035_v12 = vpop.f32.mrf.mxu1 }
 0x184   :  { %v1682_v22 = vmul.f32 %v7384_v31, %v1184_v56 }
 0x186   :  { %v1691_v36 = vsel %vm201_vm1, %v1682_v22, 0 }
 0x187   :  { %v1762_v18 = vand.u32 4294901760, %v1691_v36  ;;  %v1268_v13 = vpop.f32.mrf.mxu0 }
 0x188   :  { %v1269_v4 = vadd.f32 %v7432_v14, %v1268_v13 }
 0x189   :  { %v1763_v59 = vsub.f32 %v1691_v36, %v1762_v18  ;;  %6122 = vmatmul.mubr.f32.vlgmr.msra.gmra.mxu1 %v1762_v18  ;;  %v6046_v19 = vpop.f32.mrf.mxu0  ;;  %v179_v36 = vld [vmem:[%s7916_s13] sm:$0xf] }
 0x18a   :  { %6136 = vmatpush3.msra.mxu1 %v7277_v27  ;;  %6143 = vmatprep.mubr.msk.f32.mxu1 %vm6831_vm0, %v7974_v0 }
 0x18b   :  { %6137 = vmatprep.subr.mxu1 %v7974_v0  ;;  %v1764_v8 = vand.u32 4294901760, %v1763_v59 }
 0x18c   :  { %6138 = vmatpush3.msra.mxu1 %v7289_v30  ;;  %v1359_v24 = vpop.f32.mrf.mxu1 }
 0x18d   :  { %6139 = vmatprep.subr.mxu1 %v7974_v0  ;;  %v1765_v5 = vsub.f32 %v1763_v59, %v1764_v8  ;;  %v1360_v28 = vadd.f32 %v1359_v24, %v1269_v4 }
 0x18e   :  { %6140 = vmatpush3.msra.mxu1 %v7304_v34  ;;  %v6057_v35 = vpop.f32.mrf.mxu1 }
 0x18f   :  { %6141 = vmatprep.subr.mxu1 %v7974_v0  ;;  %v1766_v9 = vand.u32 4294901760, %v1765_v5 }
 0x190   :  { %6142 = vmatpush3.msra.mxu1 %v7322_v42 }
 0x191   :  { %6144 = vmatmul.mubr.f32.vlgmr.msra.gmra.mxu1 %v1764_v8  ;;  %6157 = vmatprep.subr.mxu1 %v7974_v0  ;;  %v1439_v50 = vpop.f32.mrf.mxu0 }
 0x192   :  { %6111 = vmatmul.mubr.f32.vlgmr.msra.gmra.mxu0 %v1766_v9  ;;  %6158 = vmatpush3.msra.mxu1 %v7277_v27  ;;  %v1440_v62 = vadd.f32 %v1439_v50, %v1360_v28 }
 0x193   :  { %6125 = vmatpush3.msra.mxu0 %v7287_v29  ;;  %6159 = vmatprep.subr.mxu1 %v7974_v0  ;;  %v6068_v2 = vpop.f32.mrf.mxu0 }
 0x194   :  { %6126 = vmatprep.subr.mxu0 %v7974_v0  ;;  %6160 = vmatpush3.msra.mxu1 %v7289_v30 }
 0x195   :  { %6127 = vmatpush3.msra.mxu0 %v7302_v33  ;;  %6161 = vmatprep.subr.mxu1 %v7974_v0  ;;  %v1516_v45 = vpop.f32.mrf.mxu1 }
 0x196   :  { %6128 = vmatprep.subr.mxu0 %v7974_v0  ;;  %6162 = vmatpush3.msra.mxu1 %v7304_v34  ;;  %v1517_v40 = vadd.f32 %v1516_v45, %v1440_v62  ;;  %v1688_v62 = vpop.permute.xlu0 %1687 }
 0x197   :  { %6129 = vmatpush3.msra.mxu0 %v7320_v39  ;;  %6163 = vmatprep.subr.mxu1 %v7974_v0  ;;  %v6079_v21 = vpop.f32.mrf.mxu1 }
 0x198   :  { %6130 = vmatprep.subr.mxu0 %v7974_v0  ;;  %6132 = vmatprep.mubr.msk.f32.mxu0 %vm6831_vm0, %v7974_v0 }
 0x199   :  { %6131 = vmatpush3.msra.mxu0 %v7337_v55  ;;  %6164 = vmatpush3.msra.mxu1 %v7322_v42 }
 0x19a   :  { %6165 = vmatprep.mubr.msk.f32.mxu1 %vm6831_vm0, %v7974_v0  ;;  %6133 = vmatmul.mubr.f32.vlgmr.msra.gmra.mxu0 %v1763_v59 }
 0x19b   :  { %6146 = vmatprep.subr.mxu0 %v7974_v0  ;;  %6166 = vmatmul.mubr.f32.vlgmr.msra.gmra.mxu1 %v1762_v18 }
 0x19c   :  { %6147 = vmatpush3.msra.mxu0 %v7299_v32  ;;  %6154 = vmatprep.mubr.msk.f32.mxu0 %vm6831_vm0, %v7974_v0  ;;  %v1599_v26 = vpop.f32.mrf.mxu0 }
 0x19d   :  { %6148 = vmatprep.subr.mxu0 %v7974_v0  ;;  %6173 = vmatprep.subr.mxu1 %v7974_v0  ;;  %v1600_v11 = vadd.f32 %v1599_v26, %v1517_v40  ;;  %v1674_v17 = vpop.f32.mrf.mxu1 }
 0x19e   :  { %6149 = vmatpush3.msra.mxu0 %v7317_v38  ;;  %6175 = vmatprep.mubr.msk.f32.mxu1 %vm6831_vm0, %v7974_v0  ;;  %v6090_v56 = vpop.f32.mrf.mxu0 }
 0x19f   :  { %6150 = vmatprep.subr.mxu0 %v7974_v0  ;;  %v7435_v12 = vadd.f32 %v1674_v17, %v1600_v11  ;;  %v6101_v22 = vpop.f32.mrf.mxu1 }
 0x1a0   :  { %6151 = vmatpush3.msra.mxu0 %v7334_v53 }
 0x1a1   :  { %6152 = vmatprep.subr.mxu0 %v7974_v0 }
 0x1a2   :  { %6153 = vmatpush3.msra.mxu0 %v7347_v60 }
 0x1a3   :  { %6155 = vmatmul.mubr.f32.vlgmr.msra.gmra.mxu0 %v1762_v18  ;;  %6168 = vmatprep.subr.mxu0 %v7974_v0  ;;  %v2203_v18 = vsel %vm2201_vm2, %v179_v36, 0 }
 0x1a4   :  { %6170 = vmatprep.mubr.msk.f32.mxu0 %vm6831_vm0, %v7974_v0  ;;  %v7440_v59 = vand.u32 4294901760, %v2203_v18 }
 0x1a6   :  { %7976 = vst [vmem:[#allocation50_spill] sm:$0xff] %v7440_v59  ;;  %v7443_v8 = vsub.f32 %v2203_v18, %v7440_v59  ;;  %6169 = vmatpush3.msra.mxu0 %v7440_v59 }
 0x1a7   :  { %6178 = vmatprep.subr.mxu0 %v7974_v0 }
 0x1a8   :  { %7977 = vst [vmem:[#allocation51_spill] sm:$0xff] %v7443_v8  ;;  %v7448_v5 = vand.u32 4294901760, %v7443_v8 }
 0x1aa   :  { %7978 = vst [vmem:[#allocation52_spill] sm:$0xff] %v7448_v5  ;;  %v2315_v9 = vsub.f32 %v7443_v8, %v7448_v5 }
 0x1ac   :  { %v7452_v13 = vand.u32 4294901760, %v2315_v9 }
 0x1ae   :  { %7979 = vst [vmem:[#allocation53_spill] sm:$0xff] %v7452_v13  ;;  %6174 = vmatpush3.msra.mxu1 %v7452_v13 }
 0x1af   :  { %6183 = vmatprep.subr.mxu1 %v7974_v0 }
 0x249   :  { %v1859_v19 = vpop.f32.mrf.mxu1 }
 0x24b   :  { %v6123_v4 = vpop.f32.mrf.mxu1 }
 0x251   :  { %v2016_v24 = vpop.f32.mrf.mxu1 }
 0x252   :  { %v1768_v28 = vpop.f32.mrf.mxu0 }
 0x253   :  { %v6145_v35 = vpop.f32.mrf.mxu1  ;;  %v1769_v2 = vadd.f32 %v1768_v28, %v1688_v62 }
 0x254   :  { %v6112_v50 = vpop.f32.mrf.mxu0 }
 0x255   :  { %v1860_v21 = vadd.f32 %v1859_v19, %v1769_v2 }
 0x25a   :  { %v1939_v45 = vpop.f32.mrf.mxu0 }
 0x25b   :  { %v2174_v40 = vpop.f32.mrf.mxu1  ;;  %v1940_v17 = vadd.f32 %v1939_v45, %v1860_v21 }
 0x25c   :  { %v6134_v26 = vpop.f32.mrf.mxu0 }
 0x25d   :  { %v6167_v11 = vpop.f32.mrf.mxu1  ;;  %v2017_v56 = vadd.f32 %v2016_v24, %v1940_v17 }
 0x263   :  { %v2099_v22 = vpop.f32.mrf.mxu0 }
 0x264   :  { %v2100_v36 = vadd.f32 %v2099_v22, %v2017_v56 }
 0x265   :  { %v6156_v18 = vpop.f32.mrf.mxu0 }
 0x266   :  { %v2175_v9 = vadd.f32 %v2174_v40, %v2100_v36  ;;  %v195_v18 = vld [vmem:[#allocation16 + $0x18] sm:$0xff] }
 0x268   :  { %v2179_v4 = vsel %vm2178_vm3, %v2175_v9, -inf }
 0x269   :  { %v2180_v60 = vrot.slane %v2179_v4, 4 }
 0x26b   :  { %v2181_v53 = vmax.f32 %v2179_v4, %v2180_v60  ;;  %v194_v4 = vld [vmem:[#allocation16 + $0x10] sm:$0xff] }
 0x26d   :  { %v2182_v35 = vrot.slane %v2181_v53, 2 }
 0x26f   :  { %v2183_v50 = vmax.f32 %v2181_v53, %v2182_v35 }
 0x271   :  { %v2184_v13 = vrot.slane %v2183_v50, 1 }
 0x273   :  { %v2185_v28 = vmax.f32 %v2183_v50, %v2184_v13  ;;  %v7484_v50 = vand.u32 4294901760, %v194_v4 }
 0x275   :  { %v2186_v62 = vsub.f32 %v2175_v9, %v2185_v28  ;;  %v7479_v9 = vand.u32 4294901760, %v195_v18  ;;  %v193_v28 = vld [vmem:[#allocation16 + $0x8] sm:$0xff] }
 0x277   :  { %v2187_v38 = vmul.f32 1.442695, %v2186_v62  ;;  %v7482_v35 = vsub.f32 %v195_v18, %v7479_v9 }
 0x279   :  { %6575 = vpow2.f32 %v2187_v38  ;;  %v7489_v62 = vand.u32 4294901760, %v7482_v35 }
 0x286   :  { %v6576_v19 = vpop.eup %6575 }
 0x287   :  { %v2189_v2 = vsel %vm2178_vm3, %v6576_v19, 0.0 }
 0x288   :  { %v2190_v24 = vrot.slane %v2189_v2, 4 }
 0x28a   :  { %v2191_v45 = vadd.f32 %v2190_v24, %v2189_v2  ;;  %v7494_v2 = vand.u32 4294901760, %v193_v28  ;;  %v192_v24 = vld [vmem:[#allocation16] sm:$0xff] }
 0x28c   :  { %v2192_v21 = vrot.slane %v2191_v45, 2 }
 0x28e   :  { %v2193_v26 = vadd.f32 %v2192_v21, %v2191_v45  ;;  %v2769_v45 = vsub.f32 %v7482_v35, %v7489_v62 }
 0x290   :  { %v2194_v11 = vrot.slane %v2193_v26, 1 }
 0x292   :  { %v2195_v40 = vadd.f32 %v2194_v11, %v2193_v26  ;;  %v7504_v26 = vsub.f32 %v193_v28, %v7494_v2  ;;  %v7506_v11 = vand.u32 4294901760, %v192_v24 }
 0x294   :  { %6577 = vrcp.f32 %v2195_v40  ;;  %v7510_v40 = vand.u32 4294901760, %v2769_v45 }
 0x296   :  { %7980 = vst [vmem:[#allocation54_spill] sm:$0xff] %v7510_v40 }
 0x2a1   :  { %v6578_v17 = vpop.eup %6577 }
 0x2a2   :  { %v2197_v56 = vmul.f32 %v6578_v17, %v6576_v19  ;;  %v7492_v19 = vsub.f32 %v194_v4, %v7484_v50 }
 0x2a4   :  { %v2199_v60 = vsel %vm2178_vm3, %v2197_v56, 0  ;;  %v7501_v21 = vand.u32 4294901760, %v7492_v19  ;;  %v7515_v56 = vand.u32 4294901760, %v7504_v26 }
 0x2a5   :  { %v2271_v53 = vand.u32 4294901760, %v2199_v60 }
 0x2a6   :  { %v2776_v17 = vsub.f32 %v7492_v19, %v7501_v21 }
 0x2a7   :  { %v2272_v22 = vsub.f32 %v2199_v60, %v2271_v53  ;;  %6176 = vmatmul.mubr.f32.vlgmr.msra.gmra.mxu1 %v2271_v53  ;;  %v7518_v60 = vsub.f32 %v192_v24, %v7506_v11 }
 0x2a8   :  { %6184 = vmatpush3.msra.mxu1 %v7440_v59  ;;  %6185 = vmatprep.mubr.msk.f32.mxu1 %vm6831_vm0, %v7974_v0 }
 0x2a9   :  { %v2273_v38 = vand.u32 4294901760, %v2272_v22  ;;  %6193 = vmatprep.subr.mxu1 %v7974_v0 }
 0x2ab   :  { %6186 = vmatmul.mubr.f32.vlgmr.msra.gmra.mxu1 %v2273_v38  ;;  %v2274_v13 = vsub.f32 %v2272_v22, %v2273_v38  ;;  %v7528_v38 = vand.u32 4294901760, %v7518_v60 }
 0x2ac   :  { %6194 = vmatpush3.msra.mxu1 %v7440_v59  ;;  %6195 = vmatprep.mubr.msk.f32.mxu1 %vm6831_vm0, %v7974_v0 }
 0x2ad   :  { %v2275_v36 = vand.u32 4294901760, %v2274_v13  ;;  %6209 = vmatprep.subr.mxu1 %v7974_v0 }
 0x2af   :  { %6171 = vmatmul.mubr.f32.vlgmr.msra.gmra.mxu0 %v2275_v36  ;;  %6196 = vmatmul.mubr.f32.vlgmr.msra.gmra.mxu1 %v2271_v53  ;;  %v2790_v36 = vsub.f32 %v7518_v60, %v7528_v38 }
 0x2b0   :  { %6179 = vmatpush3.msra.mxu0 %v7443_v8  ;;  %6180 = vmatprep.mubr.msk.f32.mxu0 %vm6831_vm0, %v7974_v0 }
 0x2b1   :  { %6188 = vmatprep.subr.mxu0 %v7974_v0  ;;  %6217 = vmatprep.mubr.msk.f32.mxu1 %vm6831_vm0, %v7974_v0  ;;  %v7538_v18 = vand.u32 4294901760, %v2790_v36 }
 0x2b2   :  { %6210 = vmatpush3.msra.mxu1 %v7510_v40 }
 0x2b3   :  { %6181 = vmatmul.mubr.f32.vlgmr.msra.gmra.mxu0 %v2272_v22  ;;  %v2783_v22 = vsub.f32 %v7504_v26, %v7515_v56  ;;  %6211 = vmatprep.subr.mxu1 %v7974_v0  ;;  %7983 = vst [vmem:[#allocation57_spill] sm:$0xff] %v7538_v18 }
 0x2b4   :  { %6189 = vmatpush3.msra.mxu0 %v7448_v5  ;;  %6190 = vmatprep.mubr.msk.f32.mxu0 %vm6831_vm0, %v7974_v0 }
 0x2b5   :  { %6198 = vmatprep.subr.mxu0 %v7974_v0  ;;  %v7532_v13 = vand.u32 4294901760, %v2783_v22 }
 0x2b7   :  { %6191 = vmatmul.mubr.f32.vlgmr.msra.gmra.mxu0 %v2271_v53  ;;  %v7523_v53 = vand.u32 4294901760, %v2776_v17  ;;  %7982 = vst [vmem:[#allocation56_spill] sm:$0xff] %v7532_v13 }
 0x2b8   :  { %6206 = vmatprep.mubr.msk.f32.mxu0 %vm6831_vm0, %v7974_v0  ;;  %6199 = vmatpush3.msra.mxu0 %v7479_v9 }
 0x2b9   :  { %6200 = vmatprep.subr.mxu0 %v7974_v0  ;;  %7981 = vst [vmem:[#allocation55_spill] sm:$0xff] %v7523_v53  ;;  %6212 = vmatpush3.msra.mxu1 %v7523_v53 }
 0x2ba   :  { %6201 = vmatpush3.msra.mxu0 %v7484_v50  ;;  %6213 = vmatprep.subr.mxu1 %v7974_v0 }
 0x2bb   :  { %6202 = vmatprep.subr.mxu0 %v7974_v0  ;;  %6214 = vmatpush3.msra.mxu1 %v7532_v13 }
 0x2bc   :  { %6203 = vmatpush3.msra.mxu0 %v7494_v2  ;;  %6215 = vmatprep.subr.mxu1 %v7974_v0 }
 0x2bd   :  { %6204 = vmatprep.subr.mxu0 %v7974_v0  ;;  %6216 = vmatpush3.msra.mxu1 %v7538_v18 }
 0x2be   :  { %6205 = vmatpush3.msra.mxu0 %v7506_v11  ;;  %6231 = vmatprep.subr.mxu1 %v7974_v0 }
 0x2bf   :  { %6220 = vmatprep.subr.mxu0 %v7974_v0 }
 0x367   :  { %v2353_v4 = vpop.f32.mrf.mxu1 }
 0x369   :  { %v6177_v28 = vpop.f32.mrf.mxu1 }
 0x36b   :  { %v2501_v24 = vpop.f32.mrf.mxu1 }
 0x36d   :  { %v6187_v45 = vpop.f32.mrf.mxu1 }
 0x36f   :  { %v2277_v17 = vpop.f32.mrf.mxu0  ;;  %v2647_v22 = vpop.f32.mrf.mxu1 }
 0x370   :  { %v2354_v40 = vadd.f32 %v2353_v4, %v2277_v17 }
 0x371   :  { %v6172_v5 = vpop.f32.mrf.mxu0  ;;  %v6197_v53 = vpop.f32.mrf.mxu1 }
 0x373   :  { %v2427_v8 = vpop.f32.mrf.mxu0 }
 0x374   :  { %v2428_v59 = vadd.f32 %v2427_v8, %v2354_v40 }
 0x375   :  { %v6182_v13 = vpop.f32.mrf.mxu0 }
 0x376   :  { %v2502_v36 = vadd.f32 %v2501_v24, %v2428_v59 }
 0x377   :  { %v2575_v32 = vpop.f32.mrf.mxu0 }
 0x378   :  { %v2576_v55 = vadd.f32 %v2575_v32, %v2502_v36 }
 0x379   :  { %v6192_v39 = vpop.f32.mrf.mxu0 }
 0x37a   :  { %v2648_v33 = vadd.f32 %v2647_v22, %v2576_v55  ;;  %v6583_v55 = vld [vmem:[%s7905_s2] sm:$0xff]  ;;  %s6833_s2 = smov [#allocation19]  }
 0x37b   :  { %s5593_s19 = sshll.u32 %s6833_s2, 4  ;;  %s5594_s19 = int_to_ptr.vmem [resolvable:$true] %s5593_s19 }
 0x37c   :  { %v2651_v18 = vmul.f32 %v2648_v33, %v7435_v12  ;;  %v3150_v33 = vld [vmem:[#allocation2 + $0x8] sm:$0xff]  ;;  %s6784_s20 = scalar_lea.vmem %s5594_s19, 32  ;;  %p6789_p9 = scmp.lt.s32.totalorder %s5594_s19, %s5594_s19 }
 0x37d   :  { %p6785_p8 = scmp.ne.s32.totalorder %s5594_s19, %s6784_s20  ;;  %p6790_p10 = scmp.lt.s32.totalorder %s6784_s20, %s6784_s20 }
 0x37e   :  { %v2652_v29 = vsel %vm201_vm1, %v2651_v18, 0.0 }
 0x37f   :  { %v2653_v28 = vrot.slane %v2652_v29, 4  ;;  %p6791_p11 = por %p6790_p10, %p6789_p9 }
 0x381   :  { %v2654_v14 = vadd.f32 %v2653_v28, %v2652_v29  ;;  %p6792_p12 = pnand %p6791_p11, %p6785_p8 }
 0x383   :  { %v2655_v45 = vrot.slane %v2654_v14, 2 }
 0x385   :  { %v2656_v31 = vadd.f32 %v2655_v45, %v2654_v14 }
 0x387   :  { %v2657_v7 = vrot.slane %v2656_v31, 1 }
 0x389   :  { %v2658_v5 = vadd.f32 %v2657_v7, %v2656_v31  ;;  %v3151_v7 = vadd.f32 %v6583_v55, %v3150_v33 }
 0x38b   :  { %v2660_v53 = vsel %vm201_vm1, %v2658_v5, 0  ;;  %v3153_v31 = vsel %vm201_vm1, %v3151_v7, 0 }
 0x38c   :  { %v2731_v4 = vand.u32 4294901760, %v2660_v53  ;;  %v7571_v14 = vand.u32 4294901760, %v3153_v31 }
 0x38e   :  { %v2732_v8 = vsub.f32 %v2660_v53, %v2731_v4  ;;  %6218 = vmatmul.mubr.f32.vlgmr.msra.gmra.mxu1 %v2731_v4  ;;  %v7582_v12 = vsub.f32 %v3153_v31, %v7571_v14 }
 0x38f   :  { %6232 = vmatpush3.msra.mxu1 %v7479_v9  ;;  %6239 = vmatprep.mubr.msk.f32.mxu1 %vm6831_vm0, %v7974_v0 }
 0x390   :  { %6233 = vmatprep.subr.mxu1 %v7974_v0  ;;  %v2733_v32 = vand.u32 4294901760, %v2732_v8  ;;  %v7594_v59 = vand.u32 4294901760, %v7582_v12 }
 0x391   :  { %6234 = vmatpush3.msra.mxu1 %v7484_v50 }
 0x392   :  { %6235 = vmatprep.subr.mxu1 %v7974_v0  ;;  %v2734_v29 = vsub.f32 %v2732_v8, %v2733_v32 }
 0x393   :  { %6236 = vmatpush3.msra.mxu1 %v7494_v2 }
 0x394   :  { %6237 = vmatprep.subr.mxu1 %v7974_v0  ;;  %v2735_v39 = vand.u32 4294901760, %v2734_v29 }
 0x395   :  { %6238 = vmatpush3.msra.mxu1 %v7506_v11 }
 0x396   :  { %6240 = vmatmul.mubr.f32.vlgmr.msra.gmra.mxu1 %v2733_v32  ;;  %6253 = vmatprep.subr.mxu1 %v7974_v0  ;;  %v7996_v32 = vld [vmem:[#allocation47_spill] sm:$0xff] }
 0x397   :  { %6207 = vmatmul.mubr.f32.vlgmr.msra.gmra.mxu0 %v2735_v39  ;;  %6254 = vmatpush3.msra.mxu1 %v7479_v9 }
 0x398   :  { %6221 = vmatpush3.msra.mxu0 %v7482_v35  ;;  %6255 = vmatprep.subr.mxu1 %v7974_v0 }
 0x399   :  { %6222 = vmatprep.subr.mxu0 %v7974_v0  ;;  %6256 = vmatpush3.msra.mxu1 %v7484_v50 }
 0x39a   :  { %6223 = vmatpush3.msra.mxu0 %v7492_v19  ;;  %6257 = vmatprep.subr.mxu1 %v7974_v0 }
 0x39b   :  { %6224 = vmatprep.subr.mxu0 %v7974_v0  ;;  %6258 = vmatpush3.msra.mxu1 %v7494_v2 }
 0x39c   :  { %6225 = vmatpush3.msra.mxu0 %v7504_v26  ;;  %6259 = vmatprep.subr.mxu1 %v7974_v0 }
 0x39d   :  { %6226 = vmatprep.subr.mxu0 %v7974_v0  ;;  %6228 = vmatprep.mubr.msk.f32.mxu0 %vm6831_vm0, %v7974_v0 }
 0x39e   :  { %6227 = vmatpush3.msra.mxu0 %v7518_v60  ;;  %6260 = vmatpush3.msra.mxu1 %v7506_v11 }
 0x39f   :  { %6261 = vmatprep.mubr.msk.f32.mxu1 %vm6831_vm0, %v7974_v0  ;;  %6229 = vmatmul.mubr.f32.vlgmr.msra.gmra.mxu0 %v2732_v8 }
 0x3a0   :  { %6242 = vmatprep.subr.mxu0 %v7974_v0  ;;  %6262 = vmatmul.mubr.f32.vlgmr.msra.gmra.mxu1 %v2731_v4 }
 0x3a1   :  { %6243 = vmatpush3.msra.mxu0 %v7489_v62  ;;  %6250 = vmatprep.mubr.msk.f32.mxu0 %vm6831_vm0, %v7974_v0 }
 0x3a2   :  { %6244 = vmatprep.subr.mxu0 %v7974_v0  ;;  %6275 = vmatprep.subr.mxu1 %v7974_v0 }
 0x3a3   :  { %6245 = vmatpush3.msra.mxu0 %v7501_v21  ;;  %6276 = vmatpush3.msra.mxu1 %v7100_v58  ;;  %v3227_v58 = vsub.f32 %v7582_v12, %v7594_v59 }
 0x3a4   :  { %6246 = vmatprep.subr.mxu0 %v7974_v0  ;;  %6277 = vmatprep.subr.mxu1 %v7974_v0 }
 0x3a5   :  { %6247 = vmatpush3.msra.mxu0 %v7515_v56  ;;  %6278 = vmatpush3.msra.mxu1 %v7113_v61  ;;  %v7613_v61 = vand.u32 4294901760, %v3227_v58 }
 0x3a6   :  { %6248 = vmatprep.subr.mxu0 %v7974_v0  ;;  %6279 = vmatprep.subr.mxu1 %v7974_v0 }
 0x3a7   :  { %6249 = vmatpush3.msra.mxu0 %v7528_v38  ;;  %6280 = vmatpush3.msra.mxu1 %v7122_v63 }
 0x3a8   :  { %6251 = vmatmul.mubr.f32.vlgmr.msra.gmra.mxu0 %v2731_v4  ;;  %6264 = vmatprep.subr.mxu0 %v7974_v0 }
 0x3a9   :  { %6265 = vmatpush3.msra.mxu0 %v7020_v37  ;;  %6281 = vmatprep.subr.mxu1 %v7974_v0 }
 0x3aa   :  { %6266 = vmatprep.subr.mxu0 %v7974_v0  ;;  %6272 = vmatprep.mubr.msk.f32.mxu0 %vm6831_vm0, %v7974_v0 }
 0x3ab   :  { %6267 = vmatpush3.msra.mxu0 %v7030_v41  ;;  %6282 = vmatpush3.msra.mxu1 %v7128_v1 }
 0x3ac   :  { %6268 = vmatprep.subr.mxu0 %v7974_v0  ;;  %6283 = vmatprep.mubr.msk.f32.mxu1 %vm6831_vm0, %v7974_v0 }
 0x3ad   :  { %6269 = vmatpush3.msra.mxu0 %v7038_v44  ;;  %6297 = vmatprep.subr.mxu1 %v7974_v0 }
 0x3ae   :  { %6270 = vmatprep.subr.mxu0 %v7974_v0  ;;  %6284 = vmatmul.mubr.f32.vlgmr.msra.gmra.mxu1 %v7571_v14 }
 0x3af   :  { %6271 = vmatpush3.msra.mxu0 %v7048_v46  ;;  %6298 = vmatpush3.msra.mxu1 %v7020_v37 }
 0x3b0   :  { %6273 = vmatmul.mubr.f32.vlgmr.msra.gmra.mxu0 %v7613_v61  ;;  %6286 = vmatprep.subr.mxu0 %v7974_v0 }
 0x3b1   :  { %6287 = vmatpush3.msra.mxu0 %v7035_v43  ;;  %6299 = vmatprep.subr.mxu1 %v7974_v0  ;;  %v7986_v43 = vld [vmem:[#allocation31_spill] sm:$0xff] }
 0x3b2   :  { %6288 = vmatprep.subr.mxu0 %v7974_v0  ;;  %6300 = vmatpush3.msra.mxu1 %v7030_v41 }
 0x3b3   :  { %6289 = vmatpush3.msra.mxu0 %v7051_v47  ;;  %6301 = vmatprep.subr.mxu1 %v7974_v0  ;;  %v7989_v47 = vld [vmem:[#allocation30_spill] sm:$0xff] }
 0x3b4   :  { %6290 = vmatprep.subr.mxu0 %v7974_v0  ;;  %6302 = vmatpush3.msra.mxu1 %v7038_v44 }
 0x3b5   :  { %6291 = vmatpush3.msra.mxu0 %v7061_v49  ;;  %6303 = vmatprep.subr.mxu1 %v7974_v0  ;;  %v7991_v49 = vld [vmem:[#allocation34_spill] sm:$0xff] }
 0x3b6   :  { %6292 = vmatprep.subr.mxu0 %v7974_v0  ;;  %6294 = vmatprep.mubr.msk.f32.mxu0 %vm6831_vm0, %v7974_v0 }
 0x3b7   :  { %6293 = vmatpush3.msra.mxu0 %v7076_v52  ;;  %6304 = vmatpush3.msra.mxu1 %v7048_v46  ;;  %v7993_v52 = vld [vmem:[#allocation43_spill] sm:$0xff] }
 0x3b8   :  { %6295 = vmatmul.mubr.f32.vlgmr.msra.gmra.mxu0 %v7582_v12  ;;  %6305 = vmatprep.mubr.msk.f32.mxu1 %vm6831_vm0, %v7974_v0 }
 0x3b9   :  { %6308 = vmatprep.subr.mxu0 %v7974_v0  ;;  %6319 = vmatprep.subr.mxu1 %v7974_v0 }
 0x3ba   :  { %6306 = vmatmul.mubr.f32.vlgmr.msra.gmra.mxu1 %v7594_v59  ;;  %6309 = vmatpush3.msra.mxu0 %v7056_v48  ;;  %v7990_v48 = vld [vmem:[#allocation32_spill] sm:$0xff] }
 0x3bb   :  { %6320 = vmatpush3.msra.mxu1 %v7020_v37  ;;  %6310 = vmatprep.subr.mxu0 %v7974_v0  ;;  %v7984_v37 = vld [vmem:[#allocation27_spill] sm:$0xff] }
 0x3bc   :  { %6321 = vmatprep.subr.mxu1 %v7974_v0  ;;  %6311 = vmatpush3.msra.mxu0 %v7073_v51  ;;  %v7992_v51 = vld [vmem:[#allocation40_spill] sm:$0xff] }
 0x3bd   :  { %6322 = vmatpush3.msra.mxu1 %v7030_v41  ;;  %6312 = vmatprep.subr.mxu0 %v7974_v0  ;;  %v7985_v41 = vld [vmem:[#allocation29_spill] sm:$0xff] }
 0x3be   :  { %6323 = vmatprep.subr.mxu1 %v7974_v0  ;;  %6313 = vmatpush3.msra.mxu0 %v7085_v54  ;;  %v7994_v54 = vld [vmem:[#allocation45_spill] sm:$0xff] }
 0x3bf   :  { %6324 = vmatpush3.msra.mxu1 %v7038_v44  ;;  %6314 = vmatprep.subr.mxu0 %v7974_v0  ;;  %v7987_v44 = vld [vmem:[#allocation33_spill] sm:$0xff] }
 0x3c0   :  { %6325 = vmatprep.subr.mxu1 %v7974_v0  ;;  %6315 = vmatpush3.msra.mxu0 %v7096_v57  ;;  %v7995_v57 = vld [vmem:[#allocation46_spill] sm:$0xff] }
 0x3c1   :  { %6316 = vmatprep.mubr.msk.f32.mxu0 %vm6831_vm0, %v7974_v0  ;;  %6326 = vmatpush3.msra.mxu1 %v7048_v46  ;;  %v7988_v46 = vld [vmem:[#allocation28_spill] sm:$0xff] }
 0x3c2   :  { %6327 = vmatprep.mubr.msk.f32.mxu1 %vm6831_vm0, %v7974_v0  ;;  %6317 = vmatmul.mubr.f32.vlgmr.msra.gmra.mxu0 %v7571_v14 }
 0x3c3   :  { %6328 = vmatmul.mubr.f32.vlgmr.msra.gmra.mxu1 %v7571_v14  ;;  %6341 = vmatprep.subr.mxu1 %v7974_v0 }
 0x3c4   :  { %6330 = vmatprep.subr.mxu0 %v7974_v0  ;;  %6342 = vmatpush3.msra.mxu1 %v7216_v16  ;;  %v7754_v16 = vld [vmem:[#allocation17] sm:$0x1] }
 0x3c5   :  { %6331 = vmatpush3.msra.mxu0 %v7185_v3  ;;  %6343 = vmatprep.subr.mxu1 %v7974_v0 }
 0x3c6   :  { %6332 = vmatprep.subr.mxu0 %v7974_v0  ;;  %6344 = vmatpush3.msra.mxu1 %v7230_v20 }
 0x3c7   :  { %6333 = vmatpush3.msra.mxu0 %v7191_v6  ;;  %6345 = vmatprep.subr.mxu1 %v7974_v0 }
 0x3c8   :  { %6334 = vmatprep.subr.mxu0 %v7974_v0  ;;  %6346 = vmatpush3.msra.mxu1 %v7241_v23 }
 0x3c9   :  { %6335 = vmatpush3.msra.mxu0 %v7201_v10  ;;  %6347 = vmatprep.subr.mxu1 %v7974_v0 }
 0x3ca   :  { %6336 = vmatprep.subr.mxu0 %v7974_v0  ;;  %6348 = vmatpush3.msra.mxu1 %v7249_v25 }
 0x3cb   :  { %6337 = vmatpush3.msra.mxu0 %v7213_v15  ;;  %6349 = vmatprep.mubr.msk.f32.mxu1 %vm6831_vm0, %v7974_v0 }
 0x3cc   :  { %6363 = vmatprep.subr.mxu1 %v7974_v0  ;;  %6338 = vmatprep.mubr.msk.f32.mxu0 %vm6831_vm0, %v7974_v0 }
 0x3cd   :  { %6350 = vmatmul.mubr.f32.vlgmr.msra.gmra.mxu1 %v7571_v14  ;;  %6352 = vmatprep.subr.mxu0 %v7974_v0 }
 0x3ce   :  { %6364 = vmatpush3.msra.mxu1 %v7185_v3  ;;  %6339 = vmatmul.mubr.f32.vlgmr.msra.gmra.mxu0 %v7613_v61 }
 0x3cf   :  { %6353 = vmatpush3.msra.mxu0 %v7984_v37  ;;  %6365 = vmatprep.subr.mxu1 %v7974_v0 }
 0x3d0   :  { %6354 = vmatprep.subr.mxu0 %v7974_v0  ;;  %6366 = vmatpush3.msra.mxu1 %v7191_v6 }
 0x3d1   :  { %6355 = vmatpush3.msra.mxu0 %v7985_v41  ;;  %6367 = vmatprep.subr.mxu1 %v7974_v0 }
 0x3d2   :  { %6356 = vmatprep.subr.mxu0 %v7974_v0  ;;  %6368 = vmatpush3.msra.mxu1 %v7201_v10 }
 0x3d3   :  { %6357 = vmatpush3.msra.mxu0 %v7986_v43  ;;  %6369 = vmatprep.subr.mxu1 %v7974_v0 }
 0x3d4   :  { %6358 = vmatprep.subr.mxu0 %v7974_v0  ;;  %6370 = vmatpush3.msra.mxu1 %v7213_v15 }
 0x3d5   :  { %6359 = vmatpush3.msra.mxu0 %v7987_v44  ;;  %6371 = vmatprep.mubr.msk.f32.mxu1 %vm6831_vm0, %v7974_v0  ;;  %v7997_v44 = vld [vmem:[#allocation48_spill] sm:$0xff] }
 0x3d6   :  { %6385 = vmatprep.subr.mxu1 %v7974_v0  ;;  %6360 = vmatprep.mubr.msk.f32.mxu0 %vm6831_vm0, %v7974_v0 }
 0x3d7   :  { %6372 = vmatmul.mubr.f32.vlgmr.msra.gmra.mxu1 %v7594_v59  ;;  %6374 = vmatprep.subr.mxu0 %v7974_v0 }
 0x3d8   :  { %6386 = vmatpush3.msra.mxu1 %v7185_v3  ;;  %6361 = vmatmul.mubr.f32.vlgmr.msra.gmra.mxu0 %v7582_v12 }
 0x3d9   :  { %6375 = vmatpush3.msra.mxu0 %v7988_v46  ;;  %6387 = vmatprep.subr.mxu1 %v7974_v0 }
 0x3da   :  { %6376 = vmatprep.subr.mxu0 %v7974_v0  ;;  %6388 = vmatpush3.msra.mxu1 %v7191_v6 }
 0x3db   :  { %6377 = vmatpush3.msra.mxu0 %v7989_v47  ;;  %6389 = vmatprep.subr.mxu1 %v7974_v0 }
 0x3dc   :  { %6378 = vmatprep.subr.mxu0 %v7974_v0  ;;  %6390 = vmatpush3.msra.mxu1 %v7201_v10 }
 0x3dd   :  { %6379 = vmatpush3.msra.mxu0 %v7990_v48  ;;  %6391 = vmatprep.subr.mxu1 %v7974_v0 }
 0x3de   :  { %6380 = vmatprep.subr.mxu0 %v7974_v0  ;;  %6392 = vmatpush3.msra.mxu1 %v7213_v15 }
 0x3df   :  { %6381 = vmatpush3.msra.mxu0 %v7991_v49  ;;  %6382 = vmatprep.mubr.msk.f32.mxu0 %vm6831_vm0, %v7974_v0 }
 0x3e0   :  { %6393 = vmatprep.mubr.msk.f32.mxu1 %vm6831_vm0, %v7974_v0  ;;  %6407 = vmatprep.subr.mxu1 %v7974_v0 }
 0x3e1   :  { %6383 = vmatmul.mubr.f32.vlgmr.msra.gmra.mxu0 %v7571_v14  ;;  %6394 = vmatmul.mubr.f32.vlgmr.msra.gmra.mxu1 %v7571_v14 }
 0x3e2   :  { %6408 = vmatpush3.msra.mxu1 %v7992_v51  ;;  %6396 = vmatprep.subr.mxu0 %v7974_v0 }
 0x3e3   :  { %6409 = vmatprep.subr.mxu1 %v7974_v0  ;;  %6415 = vmatprep.mubr.msk.f32.mxu1 %vm6831_vm0, %v7974_v0 }
 0x3e4   :  { %6410 = vmatpush3.msra.mxu1 %v7993_v52  ;;  %6397 = vmatpush3.msra.mxu0 %v7277_v27 }
 0x3e5   :  { %6411 = vmatprep.subr.mxu1 %v7974_v0  ;;  %6398 = vmatprep.subr.mxu0 %v7974_v0 }
 0x3e6   :  { %6412 = vmatpush3.msra.mxu1 %v7994_v54  ;;  %6399 = vmatpush3.msra.mxu0 %v7289_v30 }
 0x3e7   :  { %6413 = vmatprep.subr.mxu1 %v7974_v0  ;;  %6400 = vmatprep.subr.mxu0 %v7974_v0 }
 0x3e8   :  { %6414 = vmatpush3.msra.mxu1 %v7995_v57  ;;  %6401 = vmatpush3.msra.mxu0 %v7304_v34  ;;  %v7998_v57 = vld [vmem:[#allocation49_spill] sm:$0xff] }
 0x3e9   :  { %6429 = vmatprep.subr.mxu1 %v7974_v0  ;;  %6402 = vmatprep.subr.mxu0 %v7974_v0 }
 0x3ea   :  { %6403 = vmatpush3.msra.mxu0 %v7322_v42  ;;  %6404 = vmatprep.mubr.msk.f32.mxu0 %vm6831_vm0, %v7974_v0 }
 0x3eb   :  { %6418 = vmatprep.subr.mxu0 %v7974_v0 }
 0x44e   :  { %v2828_v63 = vpop.f32.mrf.mxu1 }
 0x450   :  { %v6219_v1 = vpop.f32.mrf.mxu1 }
 0x456   :  { %v2985_v3 = vpop.f32.mrf.mxu1 }
 0x457   :  { %v2737_v6 = vpop.f32.mrf.mxu0 }
 0x458   :  { %v6241_v10 = vpop.f32.mrf.mxu1  ;;  %v2738_v20 = vadd.f32 %v2737_v6, %v7754_v16 }
 0x459   :  { %v6208_v15 = vpop.f32.mrf.mxu0 }
 0x45a   :  { %v2829_v40 = vadd.f32 %v2828_v63, %v2738_v20  ;;  %v7999_v20 = vld [vmem:[#allocation35_spill] sm:$0xff] }
 0x45f   :  { %v2908_v23 = vpop.f32.mrf.mxu0 }
 0x460   :  { %v3143_v25 = vpop.f32.mrf.mxu1  ;;  %v2909_v24 = vadd.f32 %v2908_v23, %v2829_v40 }
 0x461   :  { %v6230_v13 = vpop.f32.mrf.mxu0 }
 0x462   :  { %v6263_v18 = vpop.f32.mrf.mxu1  ;;  %v2986_v17 = vadd.f32 %v2985_v3, %v2909_v24 }
 0x463   :  { %v8001_v18 = vld [vmem:[#allocation39_spill] sm:$0xff] }
 0x468   :  { %v3068_v22 = vpop.f32.mrf.mxu0 }
 0x469   :  { %v3069_v36 = vadd.f32 %v3068_v22, %v2986_v17  ;;  %v8002_v17 = vld [vmem:[#allocation42_spill] sm:$0xff] }
 0x46a   :  { %v6252_v28 = vpop.f32.mrf.mxu0  ;;  %v8004_v22 = vld [vmem:[#allocation38_spill] sm:$0xff] }
 0x46b   :  { %v3144_v45 = vadd.f32 %v3143_v25, %v3069_v36  ;;  %v8000_v25 = vld [vmem:[#allocation37_spill] sm:$0xff] }
 0x46c   :  { %v8005_v28 = vld [vmem:[#allocation53_spill] sm:$0xff] }
 0x46d   :  { %3148 = vst.msk [vmem:[#allocation19] sm:$0x1] %vm3147_vm4, %v3144_v45 }
 0x46e   :  { %v3321_v5 = vpop.f32.mrf.mxu1 }
 0x470   :  { %v3230_v53 = vpop.f32.mrf.mxu0  ;;  %v6285_v4 = vpop.f32.mrf.mxu1 }
 0x471   :  { %v3231_v29 = vadd.f32 %v7996_v32, %v3230_v53  ;;  %v8007_v32 = vld [vmem:[#allocation44_spill] sm:$0xff] }
 0x472   :  { %v6274_v8 = vpop.f32.mrf.mxu0 }
 0x473   :  { %v3322_v7 = vadd.f32 %v3321_v5, %v3231_v29  ;;  %v8006_v5 = vld [vmem:[#allocation41_spill] sm:$0xff]  ;;  %v8008_v29 = vld [vmem:[#allocation50_spill] sm:$0xff] }
 0x478   :  { %v3401_v33 = vpop.f32.mrf.mxu0 }
 0x479   :  { %v3402_v14 = vadd.f32 %v3401_v33, %v3322_v7 }
 0x47a   :  { %v3478_v39 = vpop.f32.mrf.mxu1  ;;  %v6296_v55 = vpop.f32.mrf.mxu0 }
 0x47b   :  { %v3479_v12 = vadd.f32 %v3478_v39, %v3402_v14 }
 0x47c   :  { %v6307_v31 = vpop.f32.mrf.mxu1 }
 0x482   :  { %v3561_v59 = vpop.f32.mrf.mxu0 }
 0x483   :  { %v3562_v58 = vadd.f32 %v3561_v59, %v3479_v12  ;;  %v3636_v61 = vpop.f32.mrf.mxu1  ;;  %v4132_v12 = vpop.permute.xlu0 %4131 }
 0x484   :  { %v6318_v37 = vpop.f32.mrf.mxu0 }
 0x485   :  { %v3637_v41 = vadd.f32 %v3636_v61, %v3562_v58  ;;  %v6329_v43 = vpop.f32.mrf.mxu1 }
 0x487   :  { %v4125_v46 = vmul.f32 %v3637_v41, %v7997_v44 }
 0x489   :  { %v4135_v47 = vsel %vm201_vm1, %v4125_v46, 0 }
 0x48a   :  { %v7761_v48 = vand.u32 4294901760, %v4135_v47 }
 0x48c   :  { %v4207_v49 = vsub.f32 %v4135_v47, %v7761_v48  ;;  %6416 = vmatmul.mubr.f32.vlgmr.msra.gmra.mxu1 %v7761_v48 }
 0x48d   :  { %6430 = vmatpush3.msra.mxu1 %v7277_v27  ;;  %6437 = vmatprep.mubr.msk.f32.mxu1 %vm6831_vm0, %v7974_v0  ;;  %v3806_v51 = vpop.f32.mrf.mxu1 }
 0x48e   :  { %6431 = vmatprep.subr.mxu1 %v7974_v0  ;;  %v4208_v52 = vand.u32 4294901760, %v4207_v49  ;;  %v3715_v54 = vpop.f32.mrf.mxu0 }
 0x48f   :  { %6432 = vmatpush3.msra.mxu1 %v7289_v30  ;;  %v3716_v63 = vadd.f32 %v7998_v57, %v3715_v54  ;;  %v6351_v1 = vpop.f32.mrf.mxu1 }
 0x490   :  { %6433 = vmatprep.subr.mxu1 %v7974_v0  ;;  %v4209_v3 = vsub.f32 %v4207_v49, %v4208_v52  ;;  %v6340_v6 = vpop.f32.mrf.mxu0 }
 0x491   :  { %6434 = vmatpush3.msra.mxu1 %v7304_v34  ;;  %v3807_v10 = vadd.f32 %v3806_v51, %v3716_v63 }
 0x492   :  { %6435 = vmatprep.subr.mxu1 %v7974_v0  ;;  %v4210_v15 = vand.u32 4294901760, %v4209_v3 }
 0x493   :  { %6436 = vmatpush3.msra.mxu1 %v7322_v42 }
 0x494   :  { %6438 = vmatmul.mubr.f32.vlgmr.msra.gmra.mxu1 %v4208_v52  ;;  %6451 = vmatprep.subr.mxu1 %v7974_v0 }
 0x495   :  { %6405 = vmatmul.mubr.f32.vlgmr.msra.gmra.mxu0 %v4210_v15  ;;  %6452 = vmatpush3.msra.mxu1 %v7277_v27 }
 0x496   :  { %6419 = vmatpush3.msra.mxu0 %v7999_v20  ;;  %6453 = vmatprep.subr.mxu1 %v7974_v0 }
 0x497   :  { %6420 = vmatprep.subr.mxu0 %v7974_v0  ;;  %6454 = vmatpush3.msra.mxu1 %v7289_v30  ;;  %v3963_v23 = vpop.f32.mrf.mxu1 }
 0x498   :  { %6421 = vmatpush3.msra.mxu0 %v8000_v25  ;;  %6455 = vmatprep.subr.mxu1 %v7974_v0  ;;  %v3886_v40 = vpop.f32.mrf.mxu0 }
 0x499   :  { %6422 = vmatprep.subr.mxu0 %v7974_v0  ;;  %6456 = vmatpush3.msra.mxu1 %v7304_v34  ;;  %v3887_v13 = vadd.f32 %v3886_v40, %v3807_v10  ;;  %v6373_v27 = vpop.f32.mrf.mxu1  ;;  %v8003_v34 = vld [vmem:[#allocation36_spill] sm:$0xff] }
 0x49a   :  { %6423 = vmatpush3.msra.mxu0 %v8001_v18  ;;  %6457 = vmatprep.subr.mxu1 %v7974_v0  ;;  %v6362_v24 = vpop.f32.mrf.mxu0 }
 0x49b   :  { %6424 = vmatprep.subr.mxu0 %v7974_v0  ;;  %6426 = vmatprep.mubr.msk.f32.mxu0 %vm6831_vm0, %v7974_v0  ;;  %v3964_v30 = vadd.f32 %v3963_v23, %v3887_v13 }
 0x49c   :  { %6425 = vmatpush3.msra.mxu0 %v8002_v17  ;;  %6458 = vmatpush3.msra.mxu1 %v7322_v42 }
 0x49d   :  { %6459 = vmatprep.mubr.msk.f32.mxu1 %vm6831_vm0, %v7974_v0  ;;  %6427 = vmatmul.mubr.f32.vlgmr.msra.gmra.mxu0 %v4207_v49 }
 0x49e   :  { %6440 = vmatprep.subr.mxu0 %v7974_v0  ;;  %6460 = vmatmul.mubr.f32.vlgmr.msra.gmra.mxu1 %v7761_v48 }
 0x49f   :  { %6441 = vmatpush3.msra.mxu0 %v8003_v34  ;;  %6448 = vmatprep.mubr.msk.f32.mxu0 %vm6831_vm0, %v7974_v0 }
 0x4a0   :  { %6442 = vmatprep.subr.mxu0 %v7974_v0  ;;  %6467 = vmatprep.subr.mxu1 %v7974_v0 }
 0x4a1   :  { %6443 = vmatpush3.msra.mxu0 %v8004_v22  ;;  %v4046_v42 = vpop.f32.mrf.mxu0  ;;  %v4121_v36 = vpop.f32.mrf.mxu1  ;;  %6468 = vmatpush3.msra.mxu1 %v8005_v28 }
 0x4a2   :  { %6444 = vmatprep.subr.mxu0 %v7974_v0  ;;  %v4047_v45 = vadd.f32 %v4046_v42, %v3964_v30  ;;  %6469 = vmatprep.mubr.msk.f32.mxu1 %vm6831_vm0, %v7974_v0 }
 0x4a3   :  { %6445 = vmatpush3.msra.mxu0 %v8006_v5  ;;  %v6395_v53 = vpop.f32.mrf.mxu1  ;;  %v6384_v4 = vpop.f32.mrf.mxu0  ;;  %6477 = vmatprep.subr.mxu1 %v7974_v0  ;;  %v8009_v5 = vld [vmem:[#allocation51_spill] sm:$0xff] }
 0x4a4   :  { %6446 = vmatprep.subr.mxu0 %v7974_v0  ;;  %v7809_v8 = vadd.f32 %v4121_v36, %v4047_v45  ;;  %v8010_v53 = vld [vmem:[#allocation54_spill] sm:$0xff]  ;;  %v8011_v4 = vld [vmem:[#allocation55_spill] sm:$0xff] }
 0x4a5   :  { %6447 = vmatpush3.msra.mxu0 %v8007_v32  ;;  %v8012_v32 = vld [vmem:[#allocation52_spill] sm:$0xff] }
 0x4a6   :  { %6449 = vmatmul.mubr.f32.vlgmr.msra.gmra.mxu0 %v7761_v48  ;;  %6462 = vmatprep.subr.mxu0 %v7974_v0 }
 0x4a7   :  { %6463 = vmatpush3.msra.mxu0 %v8008_v29  ;;  %6464 = vmatprep.mubr.msk.f32.mxu0 %vm6831_vm0, %v7974_v0 }
 0x4a8   :  { %6472 = vmatprep.subr.mxu0 %v7974_v0 }
 0x54c   :  { %v4303_v33 = vpop.f32.mrf.mxu1 }
 0x54e   :  { %v6417_v39 = vpop.f32.mrf.mxu1 }
 0x554   :  { %v4460_v55 = vpop.f32.mrf.mxu1 }
 0x555   :  { %v4212_v7 = vpop.f32.mrf.mxu0 }
 0x556   :  { %v6439_v31 = vpop.f32.mrf.mxu1  ;;  %v4213_v59 = vadd.f32 %v4212_v7, %v4132_v12 }
 0x557   :  { %v6406_v14 = vpop.f32.mrf.mxu0 }
 0x558   :  { %v4304_v37 = vadd.f32 %v4303_v33, %v4213_v59  ;;  %v8014_v33 = vld [vmem:[#allocation57_spill] sm:$0xff] }
 0x55d   :  { %v4383_v58 = vpop.f32.mrf.mxu0 }
 0x55e   :  { %v4618_v61 = vpop.f32.mrf.mxu1  ;;  %v4384_v44 = vadd.f32 %v4383_v58, %v4304_v37 }
 0x55f   :  { %v6428_v41 = vpop.f32.mrf.mxu0 }
 0x560   :  { %v6461_v43 = vpop.f32.mrf.mxu1  ;;  %v4461_v46 = vadd.f32 %v4460_v55, %v4384_v44 }
 0x566   :  { %v4543_v47 = vpop.f32.mrf.mxu0 }
 0x567   :  { %v4544_v48 = vadd.f32 %v4543_v47, %v4461_v46 }
 0x568   :  { %v6450_v49 = vpop.f32.mrf.mxu0 }
 0x569   :  { %v4619_v51 = vadd.f32 %v4618_v61, %v4544_v48 }
 0x56b   :  { %v4622_v52 = vsel %vm2178_vm3, %v4619_v51, -inf }
 0x56c   :  { %v4623_v54 = vrot.slane %v4622_v52, 4 }
 0x56e   :  { %v4624_v57 = vmax.f32 %v4622_v52, %v4623_v54 }
 0x570   :  { %v4625_v63 = vrot.slane %v4624_v57, 2 }
 0x572   :  { %v4626_v1 = vmax.f32 %v4624_v57, %v4625_v63 }
 0x574   :  { %v4627_v3 = vrot.slane %v4626_v1, 1 }
 0x576   :  { %v4628_v6 = vmax.f32 %v4626_v1, %v4627_v3 }
 0x578   :  { %v4629_v10 = vsub.f32 %v4619_v51, %v4628_v6 }
 0x57a   :  { %v4630_v15 = vmul.f32 1.442695, %v4629_v10 }
 0x57c   :  { %6579 = vpow2.f32 %v4630_v15 }
 0x589   :  { %v6580_v20 = vpop.eup %6579 }
 0x58a   :  { %v4632_v23 = vsel %vm2178_vm3, %v6580_v20, 0.0 }
 0x58b   :  { %v4633_v25 = vrot.slane %v4632_v23, 4 }
 0x58d   :  { %v4634_v40 = vadd.f32 %v4633_v25, %v4632_v23 }
 0x58f   :  { %v4635_v13 = vrot.slane %v4634_v40, 2 }
 0x591   :  { %v4636_v27 = vadd.f32 %v4635_v13, %v4634_v40 }
 0x593   :  { %v4637_v18 = vrot.slane %v4636_v27, 1 }
 0x595   :  { %v4638_v24 = vadd.f32 %v4637_v18, %v4636_v27 }
 0x597   :  { %6581 = vrcp.f32 %v4638_v24 }
 0x5a4   :  { %v6582_v30 = vpop.eup %6581 }
 0x5a5   :  { %v4640_v17 = vmul.f32 %v6582_v30, %v6580_v20 }
 0x5a7   :  { %v4642_v34 = vsel %vm2178_vm3, %v4640_v17, 0 }
 0x5a8   :  { %v4710_v22 = vand.u32 4294901760, %v4642_v34 }
 0x5aa   :  { %v4711_v42 = vsub.f32 %v4642_v34, %v4710_v22  ;;  %6470 = vmatmul.mubr.f32.vlgmr.msra.gmra.mxu1 %v4710_v22 }
 0x5ab   :  { %6478 = vmatpush3.msra.mxu1 %v8008_v29  ;;  %6479 = vmatprep.mubr.msk.f32.mxu1 %vm6831_vm0, %v7974_v0 }
 0x5ac   :  { %v4712_v36 = vand.u32 4294901760, %v4711_v42  ;;  %6487 = vmatprep.subr.mxu1 %v7974_v0 }
 0x5ae   :  { %6480 = vmatmul.mubr.f32.vlgmr.msra.gmra.mxu1 %v4712_v36  ;;  %v4713_v28 = vsub.f32 %v4711_v42, %v4712_v36 }
 0x5af   :  { %6488 = vmatpush3.msra.mxu1 %v8008_v29  ;;  %6489 = vmatprep.mubr.msk.f32.mxu1 %vm6831_vm0, %v7974_v0  ;;  %v8013_v29 = vld [vmem:[#allocation56_spill] sm:$0xff] }
 0x5b0   :  { %v4714_v45 = vand.u32 4294901760, %v4713_v28  ;;  %6503 = vmatprep.subr.mxu1 %v7974_v0 }
 0x5b2   :  { %6465 = vmatmul.mubr.f32.vlgmr.msra.gmra.mxu0 %v4714_v45  ;;  %6490 = vmatmul.mubr.f32.vlgmr.msra.gmra.mxu1 %v4710_v22 }
 0x5b3   :  { %6473 = vmatpush3.msra.mxu0 %v8009_v5  ;;  %6474 = vmatprep.mubr.msk.f32.mxu0 %vm6831_vm0, %v7974_v0 }
 0x5b4   :  { %6482 = vmatprep.subr.mxu0 %v7974_v0  ;;  %6504 = vmatpush3.msra.mxu1 %v8010_v53 }
 0x5b5   :  { %6505 = vmatprep.subr.mxu1 %v7974_v0  ;;  %6511 = vmatprep.mubr.msk.f32.mxu1 %vm6831_vm0, %v7974_v0 }
 0x5b6   :  { %6475 = vmatmul.mubr.f32.vlgmr.msra.gmra.mxu0 %v4711_v42  ;;  %6506 = vmatpush3.msra.mxu1 %v8011_v4 }
 0x5b7   :  { %6483 = vmatpush3.msra.mxu0 %v8012_v32  ;;  %6484 = vmatprep.mubr.msk.f32.mxu0 %vm6831_vm0, %v7974_v0 }
 0x5b8   :  { %6507 = vmatprep.subr.mxu1 %v7974_v0  ;;  %6492 = vmatprep.subr.mxu0 %v7974_v0 }
 0x5b9   :  { %6508 = vmatpush3.msra.mxu1 %v8013_v29 }
 0x5ba   :  { %6485 = vmatmul.mubr.f32.vlgmr.msra.gmra.mxu0 %v4710_v22  ;;  %6509 = vmatprep.subr.mxu1 %v7974_v0 }
 0x5bb   :  { %6510 = vmatpush3.msra.mxu1 %v8014_v33  ;;  %6493 = vmatpush3.msra.mxu0 %v7479_v9 }
 0x5bc   :  { %6525 = vmatprep.subr.mxu1 %v7974_v0  ;;  %6494 = vmatprep.subr.mxu0 %v7974_v0 }
 0x5bd   :  { %6495 = vmatpush3.msra.mxu0 %v7484_v50  ;;  %6500 = vmatprep.mubr.msk.f32.mxu0 %vm6831_vm0, %v7974_v0 }
 0x5be   :  { %6496 = vmatprep.subr.mxu0 %v7974_v0 }
 0x5bf   :  { %6497 = vmatpush3.msra.mxu0 %v7494_v2 }
 0x5c0   :  { %6498 = vmatprep.subr.mxu0 %v7974_v0 }
 0x5c1   :  { %6499 = vmatpush3.msra.mxu0 %v7506_v11 }
 0x5c2   :  { %6514 = vmatprep.subr.mxu0 %v7974_v0 }
 0x66a   :  { %v4792_v39 = vpop.f32.mrf.mxu1 }
 0x66c   :  { %v6471_v55 = vpop.f32.mrf.mxu1 }
 0x66e   :  { %v4940_v7 = vpop.f32.mrf.mxu1 }
 0x670   :  { %v6481_v31 = vpop.f32.mrf.mxu1 }
 0x672   :  { %v4716_v14 = vpop.f32.mrf.mxu0  ;;  %v5086_v12 = vpop.f32.mrf.mxu1 }
 0x673   :  { %v4793_v61 = vadd.f32 %v4792_v39, %v4716_v14 }
 0x674   :  { %v6466_v59 = vpop.f32.mrf.mxu0  ;;  %v6491_v58 = vpop.f32.mrf.mxu1 }
 0x676   :  { %v4866_v37 = vpop.f32.mrf.mxu0 }
 0x677   :  { %v4867_v41 = vadd.f32 %v4866_v37, %v4793_v61 }
 0x678   :  { %v6476_v43 = vpop.f32.mrf.mxu0 }
 0x679   :  { %v4941_v44 = vadd.f32 %v4940_v7, %v4867_v41 }
 0x67a   :  { %v5014_v46 = vpop.f32.mrf.mxu0 }
 0x67b   :  { %v5015_v47 = vadd.f32 %v5014_v46, %v4941_v44 }
 0x67c   :  { %v6486_v48 = vpop.f32.mrf.mxu0 }
 0x67d   :  { %v5087_v49 = vadd.f32 %v5086_v12, %v5015_v47 }
 0x67f   :  { %v5090_v51 = vmul.f32 %v5087_v49, %v7809_v8 }
 0x681   :  { %v5091_v52 = vsel %vm201_vm1, %v5090_v51, 0.0 }
 0x682   :  { %v5092_v54 = vrot.slane %v5091_v52, 4 }
 0x684   :  { %v5093_v57 = vadd.f32 %v5092_v54, %v5091_v52 }
 0x686   :  { %v5094_v63 = vrot.slane %v5093_v57, 2 }
 0x688   :  { %v5095_v1 = vadd.f32 %v5094_v63, %v5093_v57 }
 0x68a   :  { %v5096_v3 = vrot.slane %v5095_v1, 1 }
 0x68c   :  { %v5097_v6 = vadd.f32 %v5096_v3, %v5095_v1 }
 0x68e   :  { %v5099_v10 = vsel %vm201_vm1, %v5097_v6, 0 }
 0x68f   :  { %v5170_v15 = vand.u32 4294901760, %v5099_v10 }
 0x691   :  { %v5171_v20 = vsub.f32 %v5099_v10, %v5170_v15  ;;  %6512 = vmatmul.mubr.f32.vlgmr.msra.gmra.mxu1 %v5170_v15 }
 0x692   :  { %6526 = vmatpush3.msra.mxu1 %v7479_v9  ;;  %6533 = vmatprep.mubr.msk.f32.mxu1 %vm6831_vm0, %v7974_v0 }
 0x693   :  { %6527 = vmatprep.subr.mxu1 %v7974_v0  ;;  %v5172_v8 = vand.u32 4294901760, %v5171_v20 }
 0x694   :  { %6528 = vmatpush3.msra.mxu1 %v7484_v50 }
 0x695   :  { %6529 = vmatprep.subr.mxu1 %v7974_v0  ;;  %v5173_v23 = vsub.f32 %v5171_v20, %v5172_v8 }
 0x696   :  { %6530 = vmatpush3.msra.mxu1 %v7494_v2 }
 0x697   :  { %6531 = vmatprep.subr.mxu1 %v7974_v0  ;;  %v5174_v25 = vand.u32 4294901760, %v5173_v23 }
 0x698   :  { %6532 = vmatpush3.msra.mxu1 %v7506_v11 }
 0x699   :  { %6534 = vmatmul.mubr.f32.vlgmr.msra.gmra.mxu1 %v5172_v8  ;;  %6547 = vmatprep.subr.mxu1 %v7974_v0 }
 0x69a   :  { %6501 = vmatmul.mubr.f32.vlgmr.msra.gmra.mxu0 %v5174_v25  ;;  %6548 = vmatpush3.msra.mxu1 %v7479_v9 }
 0x69b   :  { %6515 = vmatpush3.msra.mxu0 %v7482_v35  ;;  %6549 = vmatprep.subr.mxu1 %v7974_v0 }
 0x69c   :  { %6516 = vmatprep.subr.mxu0 %v7974_v0  ;;  %6550 = vmatpush3.msra.mxu1 %v7484_v50 }
 0x69d   :  { %6517 = vmatpush3.msra.mxu0 %v7492_v19  ;;  %6551 = vmatprep.subr.mxu1 %v7974_v0 }
 0x69e   :  { %6518 = vmatprep.subr.mxu0 %v7974_v0  ;;  %6552 = vmatpush3.msra.mxu1 %v7494_v2 }
 0x69f   :  { %6519 = vmatpush3.msra.mxu0 %v7504_v26  ;;  %6553 = vmatprep.subr.mxu1 %v7974_v0 }
 0x6a0   :  { %6520 = vmatprep.subr.mxu0 %v7974_v0  ;;  %6522 = vmatprep.mubr.msk.f32.mxu0 %vm6831_vm0, %v7974_v0 }
 0x6a1   :  { %6521 = vmatpush3.msra.mxu0 %v7518_v60  ;;  %6554 = vmatpush3.msra.mxu1 %v7506_v11 }
 0x6a2   :  { %6555 = vmatprep.mubr.msk.f32.mxu1 %vm6831_vm0, %v7974_v0  ;;  %6523 = vmatmul.mubr.f32.vlgmr.msra.gmra.mxu0 %v5171_v20 }
 0x6a3   :  { %6536 = vmatprep.subr.mxu0 %v7974_v0  ;;  %6556 = vmatmul.mubr.f32.vlgmr.msra.gmra.mxu1 %v5170_v15 }
 0x6a4   :  { %6537 = vmatpush3.msra.mxu0 %v7489_v62  ;;  %6544 = vmatprep.mubr.msk.f32.mxu0 %vm6831_vm0, %v7974_v0 }
 0x6a5   :  { %6538 = vmatprep.subr.mxu0 %v7974_v0 }
 0x6a6   :  { %6539 = vmatpush3.msra.mxu0 %v7501_v21 }
 0x6a7   :  { %6540 = vmatprep.subr.mxu0 %v7974_v0 }
 0x6a8   :  { %6541 = vmatpush3.msra.mxu0 %v7515_v56 }
 0x6a9   :  { %6542 = vmatprep.subr.mxu0 %v7974_v0 }
 0x6aa   :  { %6543 = vmatpush3.msra.mxu0 %v7528_v38 }
 0x6ab   :  { %6545 = vmatmul.mubr.f32.vlgmr.msra.gmra.mxu0 %v5170_v15 }
 0x751   :  { %v5267_v9 = vpop.f32.mrf.mxu1 }
 0x753   :  { %v6513_v35 = vpop.f32.mrf.mxu1 }
 0x759   :  { %v5424_v50 = vpop.f32.mrf.mxu1 }
 0x75a   :  { %v5176_v62 = vpop.f32.mrf.mxu0 }
 0x75b   :  { %v6535_v19 = vpop.f32.mrf.mxu1  ;;  %v5177_v26 = vadd.f32 %v5176_v62, %v7754_v16 }
 0x75c   :  { %v6502_v2 = vpop.f32.mrf.mxu0 }
 0x75d   :  { %v5268_v21 = vadd.f32 %v5267_v9, %v5177_v26 }
 0x762   :  { %v5347_v11 = vpop.f32.mrf.mxu0 }
 0x763   :  { %v5582_v60 = vpop.f32.mrf.mxu1  ;;  %v5348_v27 = vadd.f32 %v5347_v11, %v5268_v21 }
 0x764   :  { %v6524_v40 = vpop.f32.mrf.mxu0 }
 0x765   :  { %v6557_v13 = vpop.f32.mrf.mxu1  ;;  %v5425_v56 = vadd.f32 %v5424_v50, %v5348_v27 }
 0x76b   :  { %v5507_v18 = vpop.f32.mrf.mxu0 }
 0x76c   :  { %v5508_v0 = vadd.f32 %v5507_v18, %v5425_v56 }
 0x76d   :  { %v6546_v38 = vpop.f32.mrf.mxu0 }
 0x76e   :  { %v5583_v24 = vadd.f32 %v5582_v60, %v5508_v0 }
 0x770   :  { %5586 = vst.msk [vmem:[#allocation19 + $0x1] sm:$0x1] %vm3147_vm4, %v5583_v24 }
 0x771   :  { %6795 = shalt.err (!%p6792_p12)
}
 0x772   :  { %5596 = dma.vmem_to_hbm [thread:$0]  %s5594_s19, 32, %s7917_s14, [#allocation4]  }
 0x773   :  { %6816 = dma.done.wait [#allocation4], 32  }
 0x774   :  { %6817 = vsyncadd [#allocation4], 4294967264 }
 0x775   :  { %5600 = vsyncpa [#allocation3], 1 }
 0x776   :  { %5601 = vsyncpa [#allocation6], 1 }
 0x777   :  { %5602 = vsyncpa [#allocation9], 1 }
 0x778   :  { %5603 = vsyncpa [#allocation12], 1 }
 0x779   :  { %5604 = vsyncpa [#allocation15], 1 }
 0x77a   :  { %5605 = vsyncpa [#allocation18], 1 }
 0x77b   :  { %5606 = vsyncpa [#allocation4], 1 }

</bundles_post_ra>
